<compile_context>
chip_gen: v7x
topology: tpu7x:2x2x1
jax: 0.10.0
libtpu: 0.0.40
codegen_flags: <defaults>
</compile_context>

<pallas_src>
from functools import partial

import numpy as np
import jax
import jax.numpy as jnp
from jax.experimental import pallas as pl
from jax.experimental.pallas import tpu as pltpu

T = 4.0        # temperature
ALPHA = 0.5    # KD mixing weight
EPS = 1e-7

_TAPS = tuple((dh, dw) for dh in (-1, 0, 1) for dw in (-1, 0, 1))


def _make_tap_masks(H, W, rep):
    """(6*rep, H*W) 0/1 masks, in tap order, for the 6 dw!=0 taps only
    (dh=+-1, dw=0 taps are already zeroed by the zero halo).  Pre-broadcast to
    `rep` sublanes so the kernel never does a (1,N)->(rep,N) broadcast."""
    N = H * W
    ii, jj = np.divmod(np.arange(N), W)
    blocks = []
    for dh, dw in _TAPS:
        if dw == 0:
            continue
        m = ((ii + dh >= 0) & (ii + dh < H) &
             (jj + dw >= 0) & (jj + dw < W)).astype(np.float32)
        blocks.append(np.broadcast_to(m[None, :], (rep, N)))
    return np.concatenate(blocks, axis=0)


def _flat_conv_w(w_hwio, b, tap_stride, ch_offset, ncol):
    """(3,3,Cin,Cout)+(Cout,) -> (Cout, ncol) im2col weight with the bias folded
    into the LAST column (the patch carries a persistent ones row there).
    Column k*tap_stride + ch_offset + ci holds w[kh,kw,ci,co] with k=kh*3+kw;
    every other column is zero, so block-fused / zero-padded patches multiply
    out exactly."""
    _, _, cin, cout = w_hwio.shape
    w = jnp.transpose(w_hwio, (3, 0, 1, 2)).reshape(cout, 9, cin)
    blk = jnp.zeros((cout, 9, tap_stride), jnp.float32)
    blk = blk.at[:, :, ch_offset:ch_offset + cin].set(w.astype(jnp.float32))
    out = jnp.zeros((cout, ncol), jnp.float32)
    out = out.at[:, :9 * tap_stride].set(blk.reshape(cout, 9 * tap_stride))
    out = out.at[:, ncol - 1].set(b.astype(jnp.float32))
    return out


def _dis_fused_kernel(x2_ref, masks_ref, w_ref, out_ref,
                      pad_ref, patch_ref, *, temp, C, H, W):
    N = H * W
    C2 = 2 * C
    halo = (pad_ref.shape[1] - N) // 2          # lane-aligned halo (>= W+1)

    x2 = x2_ref[0].astype(jnp.float32)          # (2C, N) = [y_s ; y_t]
    ys = x2[:C]
    yt = x2[C:]

    # ------------------------------------------------------------------
    # KL term: sum( softmax(y_t/T) * (log_softmax(y_t/T) - p_s) ),
    # p_s = log_softmax(y_s/T) + 1e-7; softmax over the channel (sublane) axis.
    # ------------------------------------------------------------------
    inv_t = 1.0 / temp
    s = ys * inv_t
    t = yt * inv_t
    s_c = s - jnp.max(s, axis=0, keepdims=True)
    p_s = (s_c - jnp.log(jnp.sum(jnp.exp(s_c), axis=0, keepdims=True))) + EPS
    t_c = t - jnp.max(t, axis=0, keepdims=True)
    e_t = jnp.exp(t_c)
    denom_t = jnp.sum(e_t, axis=0, keepdims=True)
    p_t = e_t * pl.reciprocal(denom_t, approx=True)
    log_p_t = t_c - jnp.log(denom_t)
    kl_b = jnp.sum(p_t * (log_p_t - p_s))

    # ------------------------------------------------------------------
    # Fused self-attention for BOTH inputs: one Gram matmul on the stacked
    # (2C, N) tensor, block-masked softmax (off-diagonal blocks -> 0),
    # one (2C,2C)@(2C,N) apply  ->  sa = [as_map ; at_map].
    # ------------------------------------------------------------------
    gram = jax.lax.dot_general(x2, x2, (((1,), (1,)), ((), ())),
                               preferred_element_type=jnp.float32)   # (2C, 2C)
    r = jax.lax.broadcasted_iota(jnp.int32, (C2, C2), 0)
    c = jax.lax.broadcasted_iota(jnp.int32, (C2, C2), 1)
    same_block = (r < C) == (c < C)
    logits = jnp.where(same_block, gram, jnp.float32(-1e30))
    e = jnp.exp(logits - jnp.max(logits, axis=-1, keepdims=True))    # off-block -> 0
    attn = e * pl.reciprocal(jnp.sum(e, axis=-1, keepdims=True), approx=True)
    sa = jnp.dot(attn, x2, preferred_element_type=jnp.float32)       # (2C, N)

    # ------------------------------------------------------------------
    # Conv scratch init: only the two halo strips + the persistent ones row
    # (interiors are fully overwritten by every patch build).
    # ------------------------------------------------------------------
    zero_strip = jnp.zeros((C2, halo), jnp.float32)
    pad_ref[:, :halo] = zero_strip
    pad_ref[:, halo + N:] = zero_strip
    patch_ref[9 * C2:9 * C2 + 1, :] = jnp.ones((1, N), jnp.float32)

    def build_patch(x, cin):
        # Stage activation once (lane-aligned), then read 9 statically shifted
        # windows; only the 6 dw!=0 taps need masking (halo zeroes the rest).
        pad_ref[:cin, halo:halo + N] = x
        m = 0
        for k, (dh, dw) in enumerate(_TAPS):
            off = dh * W + dw
            tap = pad_ref[:cin, halo + off:halo + off + N]
            if dw != 0:
                tap = tap * masks_ref[m * C2:m * C2 + cin, :]
                m += 1
            patch_ref[k * cin:(k + 1) * cin, :] = tap

    def conv_matmul(w_slice):
        # (Cout, 9*2C+1) @ (9*2C+1, N); bias comes from the ones row, unused /
        # stale patch rows are killed by zero weight columns.
        return jnp.dot(w_slice, patch_ref[...], preferred_element_type=jnp.float32)

    # build 1: [x_dep ; x_rgb] = [conv1_dep(at_map) ; conv1_rgb(as_map)]
    build_patch(sa, C2)
    dep_rgb = conv_matmul(w_ref[0:C2])
    # build 2: layer_ful2(cat([x_dep, x_rgb], dim=1)) -- order already matches
    build_patch(dep_rgb, C2)
    ful2 = conv_matmul(w_ref[C2:C2 + C])
    # build 3: out_dim(ful2)
    build_patch(ful2, C)
    cim = conv_matmul(w_ref[C2 + C:C2 + 2 * C])

    # ------------------------------------------------------------------
    # MSE( as_map*cim, at_map*cim ) -- partial sum here, mean in wrapper.
    # ------------------------------------------------------------------
    d = (sa[:C] - sa[C:]) * cim
    mse_b = jnp.sum(d * d)

    out_ref[...] = jnp.concatenate(
        [jnp.broadcast_to(kl_b, (1, 128)),
         jnp.broadcast_to(mse_b, (1, 128))], axis=0).reshape(1, 2, 128)


def dis_forward(y_s, y_t, params, temp=T, alpha=ALPHA):
    B, C, H, W = y_s.shape
    N = H * W
    C2 = 2 * C
    ncol = 9 * C2 + 1                              # tap columns + bias column
    halo = -(-(W + 1) // 128) * 128                # lane-aligned halo (128 for W=16)

    # NCHW -> (B, 2C, H*W): free reshapes + one tiny concat; fills 8 sublanes.
    x2 = jnp.concatenate([y_s.reshape(B, C, N), y_t.reshape(B, C, N)], axis=1)
    masks = jnp.asarray(_make_tap_masks(H, W, C2))                       # (6*2C, N)

    # One packed weight array: rows [0:2C] fused conv1, [2C:3C] layer_ful2,
    # [3C:4C] out_dim.  Biases folded into the last column.
    w1 = jnp.concatenate([
        _flat_conv_w(params["w_dep"], params["b_dep"], C2, C, ncol),     # x_dep rows (reads at_map block)
        _flat_conv_w(params["w_rgb"], params["b_rgb"], C2, 0, ncol),     # x_rgb rows (reads as_map block)
    ], axis=0)
    w2 = _flat_conv_w(params["w_ful2"], params["b_ful2"], C2, 0, ncol)
    w3 = _flat_conv_w(params["w_out"], params["b_out"], C, 0, ncol)      # cols 9C..9*2C-1 are zero
    wall = jnp.concatenate([w1, w2, w3], axis=0)                         # (4C, ncol)

    cost = pl.CostEstimate(
        flops=int(B * (4 * C2 * C2 * N                 # gram + attention apply
                       + 2 * (C2 + 2 * C) * ncol * N   # three fused convs
                       + 40 * C * N)),                 # elementwise / reductions
        transcendentals=int(B * (6 * C * N + 4 * C2 * C2)),
        bytes_accessed=int(4 * (B * C2 * N + masks.size + wall.size + B * 2 * 128)),
    )

    parts = pl.pallas_call(
        partial(_dis_fused_kernel, temp=float(temp), C=C, H=H, W=W),
        grid=(B,),
        in_specs=[
            pl.BlockSpec((1, C2, N), lambda b: (b, 0, 0)),     # stacked y_s/y_t
            pl.BlockSpec(masks.shape, lambda b: (0, 0)),       # constant: resident
            pl.BlockSpec((4 * C, ncol), lambda b: (0, 0)),     # constant: resident
        ],
        out_specs=pl.BlockSpec((1, 2, 128), lambda b: (b, 0, 0)),
        out_shape=jax.ShapeDtypeStruct((B, 2, 128), jnp.float32),
        scratch_shapes=[
            pltpu.VMEM((C2, N + 2 * halo), jnp.float32),       # halo'd activation rows
            pltpu.VMEM((9 * C2 + 1, N), jnp.float32),          # im2col patch + ones row
        ],
        compiler_params=pltpu.CompilerParams(
            dimension_semantics=("parallel",),                 # v7x: batch across 2 TCs
            vmem_limit_bytes=32 * 1024 * 1024,
        ),
        cost_estimate=cost,
    )(x2, masks, wall)

    kl_loss = jnp.sum(parts[:, 0, 0]) * (temp ** 2) / B
    mse = jnp.sum(parts[:, 1, 0]) / (B * C * H * W)
    loss = alpha * kl_loss + (1.0 - alpha) * mse
    return loss  # scalar; .mean() of a scalar is a no-op


def init_params(key, C):
    ks = jax.random.split(key, 8)
    w = lambda k, cin, cout: jax.random.normal(k, (3, 3, cin, cout), jnp.float32) * 0.1
    b = lambda k, cout: jax.random.normal(k, (cout,), jnp.float32) * 0.01
    return dict(
        w_rgb=w(ks[0], C, C), b_rgb=b(ks[1], C),
        w_dep=w(ks[2], C, C), b_dep=b(ks[3], C),
        w_ful2=w(ks[4], 2 * C, C), b_ful2=b(ks[5], C),
        w_out=w(ks[6], C, C), b_out=b(ks[7], C),
    )


if __name__ == "__main__":
    key = jax.random.PRNGKey(0)
    k1, k2, kp = jax.random.split(key, 3)
    B, C, H, W = 2, 4, 16, 16          # in_dim = 4
    y_s = jax.random.normal(k1, (B, C, H, W), jnp.float32)
    y_t = jax.random.normal(k2, (B, C, H, W), jnp.float32)
    params = init_params(kp, C)

    loss = jax.jit(dis_forward)(y_s, y_t, params)
    jax.block_until_ready(loss)
    print("KERNEL_OK")
</pallas_src>

<mosaic_0001>
module attributes {stable_mosaic.version = 11 : i64} {
  func.func @_dis_fused_kernel(%arg0: i32, %arg1: memref<1x8x256xf32, #tpu.memory_space<vmem>>, %arg2: memref<48x256xf32, #tpu.memory_space<vmem>>, %arg3: memref<16x73xf32, #tpu.memory_space<vmem>>, %arg4: memref<1x2x128xf32, #tpu.memory_space<vmem>>, %arg5: memref<8x512xf32, #tpu.memory_space<vmem>>, %arg6: memref<73x256xf32, #tpu.memory_space<vmem>>) attributes {dimension_semantics = [#tpu.dimension_semantics<parallel>], iteration_bounds = array<i64: 2>, scalar_prefetch = 0 : i64, scratch_operands = 2 : i64, tpu.core_type = #tpu.core_type<tc>, window_params = [{transform_indices = @transform_0, window_bounds = array<i64: 1, 8, 256>}, {pipeline_mode = #tpu.pipeline_mode<synchronous>, transform_indices = @transform_1, window_bounds = array<i64: 48, 256>}, {pipeline_mode = #tpu.pipeline_mode<synchronous>, transform_indices = @transform_2, window_bounds = array<i64: 16, 73>}, {transform_indices = @transform_3, window_bounds = array<i64: 1, 2, 128>}]} {
    %c0 = arith.constant 0 : index
    %c0_0 = arith.constant 0 : index
    %c0_1 = arith.constant 0 : index
    %0 = vector.load %arg1[%c0, %c0_0, %c0_1] : memref<1x8x256xf32, #tpu.memory_space<vmem>>, vector<1x8x256xf32>
    %1 = vector.shape_cast %0 : vector<1x8x256xf32> to vector<8x256xf32>
    %2 = vector.extract_strided_slice %1 {offsets = [0, 0], sizes = [4, 256], strides = [1, 1]} : vector<8x256xf32> to vector<4x256xf32>
    %3 = vector.extract_strided_slice %1 {offsets = [4, 0], sizes = [4, 256], strides = [1, 1]} : vector<8x256xf32> to vector<4x256xf32>
    %cst = arith.constant 2.500000e-01 : f32
    %4 = vector.broadcast %cst : f32 to vector<4x256xf32>
    %5 = arith.mulf %2, %4 : vector<4x256xf32>
    %cst_2 = arith.constant 2.500000e-01 : f32
    %6 = vector.broadcast %cst_2 : f32 to vector<4x256xf32>
    %7 = arith.mulf %3, %6 : vector<4x256xf32>
    %cst_3 = arith.constant dense<0xFF800000> : vector<256xf32>
    %8 = vector.multi_reduction <maximumf>, %5, %cst_3 [0] : vector<4x256xf32> to vector<256xf32>
    %9 = vector.shape_cast %8 : vector<256xf32> to vector<1x256xf32>
    %10 = vector.broadcast %9 : vector<1x256xf32> to vector<4x256xf32>
    %11 = arith.subf %5, %10 : vector<4x256xf32>
    %12 = math.exp %11 : vector<4x256xf32>
    %cst_4 = arith.constant dense<0.000000e+00> : vector<256xf32>
    %13 = vector.multi_reduction <add>, %12, %cst_4 [0] : vector<4x256xf32> to vector<256xf32>
    %14 = vector.shape_cast %13 : vector<256xf32> to vector<1x256xf32>
    %15 = math.log %14 : vector<1x256xf32>
    %16 = vector.broadcast %15 : vector<1x256xf32> to vector<4x256xf32>
    %17 = arith.subf %11, %16 : vector<4x256xf32>
    %cst_5 = arith.constant 1.000000e-07 : f32
    %18 = vector.broadcast %cst_5 : f32 to vector<4x256xf32>
    %19 = arith.addf %17, %18 : vector<4x256xf32>
    %cst_6 = arith.constant dense<0xFF800000> : vector<256xf32>
    %20 = vector.multi_reduction <maximumf>, %7, %cst_6 [0] : vector<4x256xf32> to vector<256xf32>
    %21 = vector.shape_cast %20 : vector<256xf32> to vector<1x256xf32>
    %22 = vector.broadcast %21 : vector<1x256xf32> to vector<4x256xf32>
    %23 = arith.subf %7, %22 : vector<4x256xf32>
    %24 = math.exp %23 : vector<4x256xf32>
    %cst_7 = arith.constant dense<0.000000e+00> : vector<256xf32>
    %25 = vector.multi_reduction <add>, %24, %cst_7 [0] : vector<4x256xf32> to vector<256xf32>
    %26 = vector.shape_cast %25 : vector<256xf32> to vector<1x256xf32>
    %27 = tpu.reciprocal %26 {approx = true} : vector<1x256xf32> -> vector<1x256xf32>
    %28 = vector.broadcast %27 : vector<1x256xf32> to vector<4x256xf32>
    %29 = arith.mulf %24, %28 : vector<4x256xf32>
    %30 = math.log %26 : vector<1x256xf32>
    %31 = vector.broadcast %30 : vector<1x256xf32> to vector<4x256xf32>
    %32 = arith.subf %23, %31 : vector<4x256xf32>
    %33 = arith.subf %32, %19 : vector<4x256xf32>
    %34 = arith.mulf %29, %33 : vector<4x256xf32>
    %35 = vector.shape_cast %34 : vector<4x256xf32> to vector<1x4x256xf32>
    %cst_8 = arith.constant dense<0.000000e+00> : vector<1xf32>
    %36 = vector.multi_reduction <add>, %35, %cst_8 [1, 2] : vector<1x4x256xf32> to vector<1xf32>
    %37 = vector.shape_cast %36 : vector<1xf32> to vector<1x1x1xf32>
    %38 = vector.extract %37[0, 0, 0] : f32 from vector<1x1x1xf32>
    %cst_9 = arith.constant dense<0.000000e+00> : vector<8x8xf32>
    %39 = tpu.matmul %1, %1, %cst_9 {dimension_numbers = #tpu.dot_dimension_numbers<[1], [1], [0], [0], [0, 0, 1, 0], [], []>} : vector<8x256xf32>, vector<8x256xf32>, vector<8x8xf32> -> vector<8x8xf32>
    %40 = tpu.iota {dimensions = array<i32: 0>} : vector<8x8xi32>
    %41 = tpu.iota {dimensions = array<i32: 1>} : vector<8x8xi32>
    %c4_i32 = arith.constant 4 : i32
    %42 = vector.broadcast %c4_i32 : i32 to vector<8x8xi32>
    %43 = arith.cmpi slt, %40, %42 : vector<8x8xi32>
    %c4_i32_10 = arith.constant 4 : i32
    %44 = vector.broadcast %c4_i32_10 : i32 to vector<8x8xi32>
    %45 = arith.cmpi slt, %41, %44 : vector<8x8xi32>
    %46 = arith.xori %43, %45 : vector<8x8xi1>
    %cst_11 = arith.constant dense<true> : vector<8x8xi1>
    %47 = arith.xori %46, %cst_11 : vector<8x8xi1>
    %cst_12 = arith.constant -1.000000e+30 : f32
    %48 = vector.broadcast %cst_12 : f32 to vector<8x8xf32>
    %49 = arith.select %47, %39, %48 : vector<8x8xi1>, vector<8x8xf32>
    %cst_13 = arith.constant dense<0xFF800000> : vector<8xf32>
    %50 = vector.multi_reduction <maximumf>, %49, %cst_13 [1] : vector<8x8xf32> to vector<8xf32>
    %51 = vector.shape_cast %50 : vector<8xf32> to vector<8x1xf32>
    %52 = vector.broadcast %51 : vector<8x1xf32> to vector<8x8xf32>
    %53 = arith.subf %49, %52 : vector<8x8xf32>
    %54 = math.exp %53 : vector<8x8xf32>
    %cst_14 = arith.constant dense<0.000000e+00> : vector<8xf32>
    %55 = vector.multi_reduction <add>, %54, %cst_14 [1] : vector<8x8xf32> to vector<8xf32>
    %56 = vector.shape_cast %55 : vector<8xf32> to vector<8x1xf32>
    %57 = tpu.reciprocal %56 {approx = true} : vector<8x1xf32> -> vector<8x1xf32>
    %58 = vector.broadcast %57 : vector<8x1xf32> to vector<8x8xf32>
    %59 = arith.mulf %54, %58 : vector<8x8xf32>
    %cst_15 = arith.constant dense<0.000000e+00> : vector<8x256xf32>
    %60 = tpu.matmul %59, %1, %cst_15 {dimension_numbers = #tpu.dot_dimension_numbers<[1], [0], [0], [1], [0, 0, 1, 1], [], []>} : vector<8x8xf32>, vector<8x256xf32>, vector<8x256xf32> -> vector<8x256xf32>
    %cst_16 = arith.constant 0.000000e+00 : f32
    %61 = vector.broadcast %cst_16 : f32 to vector<8x128xf32>
    %c0_17 = arith.constant 0 : index
    %c0_18 = arith.constant 0 : index
    %62 = vector.load %arg5[%c0_17, %c0_18] : memref<8x512xf32, #tpu.memory_space<vmem>>, vector<8x128xf32>
    tpu.vector_store %arg5[%c0_17, %c0_18], %61 {strides = array<i32>} : memref<8x512xf32, #tpu.memory_space<vmem>>, vector<8x128xf32>,
    %c0_19 = arith.constant 0 : index
    %c384 = arith.constant 384 : index
    %63 = vector.load %arg5[%c0_19, %c384] : memref<8x512xf32, #tpu.memory_space<vmem>>, vector<8x128xf32>
    tpu.vector_store %arg5[%c0_19, %c384], %61 {strides = array<i32>} : memref<8x512xf32, #tpu.memory_space<vmem>>, vector<8x128xf32>,
    %cst_20 = arith.constant 1.000000e+00 : f32
    %64 = vector.broadcast %cst_20 : f32 to vector<1x256xf32>
    %c72 = arith.constant 72 : index
    %c0_21 = arith.constant 0 : index
    %65 = vector.load %arg6[%c72, %c0_21] : memref<73x256xf32, #tpu.memory_space<vmem>>, vector<1x256xf32>
    tpu.vector_store %arg6[%c72, %c0_21], %64 {strides = array<i32>} : memref<73x256xf32, #tpu.memory_space<vmem>>, vector<1x256xf32>,
    %c0_22 = arith.constant 0 : index
    %c128 = arith.constant 128 : index
    %66 = vector.load %arg5[%c0_22, %c128] : memref<8x512xf32, #tpu.memory_space<vmem>>, vector<8x256xf32>
    tpu.vector_store %arg5[%c0_22, %c128], %60 {strides = array<i32>} : memref<8x512xf32, #tpu.memory_space<vmem>>, vector<8x256xf32>,
    %c0_23 = arith.constant 0 : index
    %c111 = arith.constant 111 : index
    %67 = vector.load %arg5[%c0_23, %c111] : memref<8x512xf32, #tpu.memory_space<vmem>>, vector<8x256xf32>
    %c0_24 = arith.constant 0 : index
    %c0_25 = arith.constant 0 : index
    %68 = vector.load %arg2[%c0_24, %c0_25] : memref<48x256xf32, #tpu.memory_space<vmem>>, vector<8x256xf32>
    %69 = arith.mulf %67, %68 : vector<8x256xf32>
    %c0_26 = arith.constant 0 : index
    %c0_27 = arith.constant 0 : index
    %70 = vector.load %arg6[%c0_26, %c0_27] : memref<73x256xf32, #tpu.memory_space<vmem>>, vector<8x256xf32>
    tpu.vector_store %arg6[%c0_26, %c0_27], %69 {strides = array<i32>} : memref<73x256xf32, #tpu.memory_space<vmem>>, vector<8x256xf32>,
    %c0_28 = arith.constant 0 : index
    %c112 = arith.constant 112 : index
    %71 = vector.load %arg5[%c0_28, %c112] : memref<8x512xf32, #tpu.memory_space<vmem>>, vector<8x256xf32>
    %c8 = arith.constant 8 : index
    %c0_29 = arith.constant 0 : index
    %72 = vector.load %arg6[%c8, %c0_29] : memref<73x256xf32, #tpu.memory_space<vmem>>, vector<8x256xf32>
    tpu.vector_store %arg6[%c8, %c0_29], %71 {strides = array<i32>} : memref<73x256xf32, #tpu.memory_space<vmem>>, vector<8x256xf32>,
    %c0_30 = arith.constant 0 : index
    %c113 = arith.constant 113 : index
    %73 = vector.load %arg5[%c0_30, %c113] : memref<8x512xf32, #tpu.memory_space<vmem>>, vector<8x256xf32>
    %c8_31 = arith.constant 8 : index
    %c0_32 = arith.constant 0 : index
    %74 = vector.load %arg2[%c8_31, %c0_32] : memref<48x256xf32, #tpu.memory_space<vmem>>, vector<8x256xf32>
    %75 = arith.mulf %73, %74 : vector<8x256xf32>
    %c16 = arith.constant 16 : index
    %c0_33 = arith.constant 0 : index
    %76 = vector.load %arg6[%c16, %c0_33] : memref<73x256xf32, #tpu.memory_space<vmem>>, vector<8x256xf32>
    tpu.vector_store %arg6[%c16, %c0_33], %75 {strides = array<i32>} : memref<73x256xf32, #tpu.memory_space<vmem>>, vector<8x256xf32>,
    %c0_34 = arith.constant 0 : index
    %c127 = arith.constant 127 : index
    %77 = vector.load %arg5[%c0_34, %c127] : memref<8x512xf32, #tpu.memory_space<vmem>>, vector<8x256xf32>
    %c16_35 = arith.constant 16 : index
    %c0_36 = arith.constant 0 : index
    %78 = vector.load %arg2[%c16_35, %c0_36] : memref<48x256xf32, #tpu.memory_space<vmem>>, vector<8x256xf32>
    %79 = arith.mulf %77, %78 : vector<8x256xf32>
    %c24 = arith.constant 24 : index
    %c0_37 = arith.constant 0 : index
    %80 = vector.load %arg6[%c24, %c0_37] : memref<73x256xf32, #tpu.memory_space<vmem>>, vector<8x256xf32>
    tpu.vector_store %arg6[%c24, %c0_37], %79 {strides = array<i32>} : memref<73x256xf32, #tpu.memory_space<vmem>>, vector<8x256xf32>,
    %c0_38 = arith.constant 0 : index
    %c128_39 = arith.constant 128 : index
    %81 = vector.load %arg5[%c0_38, %c128_39] : memref<8x512xf32, #tpu.memory_space<vmem>>, vector<8x256xf32>
    %c32 = arith.constant 32 : index
    %c0_40 = arith.constant 0 : index
    %82 = vector.load %arg6[%c32, %c0_40] : memref<73x256xf32, #tpu.memory_space<vmem>>, vector<8x256xf32>
    tpu.vector_store %arg6[%c32, %c0_40], %81 {strides = array<i32>} : memref<73x256xf32, #tpu.memory_space<vmem>>, vector<8x256xf32>,
    %c0_41 = arith.constant 0 : index
    %c129 = arith.constant 129 : index
    %83 = vector.load %arg5[%c0_41, %c129] : memref<8x512xf32, #tpu.memory_space<vmem>>, vector<8x256xf32>
    %c24_42 = arith.constant 24 : index
    %c0_43 = arith.constant 0 : index
    %84 = vector.load %arg2[%c24_42, %c0_43] : memref<48x256xf32, #tpu.memory_space<vmem>>, vector<8x256xf32>
    %85 = arith.mulf %83, %84 : vector<8x256xf32>
    %c40 = arith.constant 40 : index
    %c0_44 = arith.constant 0 : index
    %86 = vector.load %arg6[%c40, %c0_44] : memref<73x256xf32, #tpu.memory_space<vmem>>, vector<8x256xf32>
    tpu.vector_store %arg6[%c40, %c0_44], %85 {strides = array<i32>} : memref<73x256xf32, #tpu.memory_space<vmem>>, vector<8x256xf32>,
    %c0_45 = arith.constant 0 : index
    %c143 = arith.constant 143 : index
    %87 = vector.load %arg5[%c0_45, %c143] : memref<8x512xf32, #tpu.memory_space<vmem>>, vector<8x256xf32>
    %c32_46 = arith.constant 32 : index
    %c0_47 = arith.constant 0 : index
    %88 = vector.load %arg2[%c32_46, %c0_47] : memref<48x256xf32, #tpu.memory_space<vmem>>, vector<8x256xf32>
    %89 = arith.mulf %87, %88 : vector<8x256xf32>
    %c48 = arith.constant 48 : index
    %c0_48 = arith.constant 0 : index
    %90 = vector.load %arg6[%c48, %c0_48] : memref<73x256xf32, #tpu.memory_space<vmem>>, vector<8x256xf32>
    tpu.vector_store %arg6[%c48, %c0_48], %89 {strides = array<i32>} : memref<73x256xf32, #tpu.memory_space<vmem>>, vector<8x256xf32>,
    %c0_49 = arith.constant 0 : index
    %c144 = arith.constant 144 : index
    %91 = vector.load %arg5[%c0_49, %c144] : memref<8x512xf32, #tpu.memory_space<vmem>>, vector<8x256xf32>
    %c56 = arith.constant 56 : index
    %c0_50 = arith.constant 0 : index
    %92 = vector.load %arg6[%c56, %c0_50] : memref<73x256xf32, #tpu.memory_space<vmem>>, vector<8x256xf32>
    tpu.vector_store %arg6[%c56, %c0_50], %91 {strides = array<i32>} : memref<73x256xf32, #tpu.memory_space<vmem>>, vector<8x256xf32>,
    %c0_51 = arith.constant 0 : index
    %c145 = arith.constant 145 : index
    %93 = vector.load %arg5[%c0_51, %c145] : memref<8x512xf32, #tpu.memory_space<vmem>>, vector<8x256xf32>
    %c40_52 = arith.constant 40 : index
    %c0_53 = arith.constant 0 : index
    %94 = vector.load %arg2[%c40_52, %c0_53] : memref<48x256xf32, #tpu.memory_space<vmem>>, vector<8x256xf32>
    %95 = arith.mulf %93, %94 : vector<8x256xf32>
    %c64 = arith.constant 64 : index
    %c0_54 = arith.constant 0 : index
    %96 = vector.load %arg6[%c64, %c0_54] : memref<73x256xf32, #tpu.memory_space<vmem>>, vector<8x256xf32>
    tpu.vector_store %arg6[%c64, %c0_54], %95 {strides = array<i32>} : memref<73x256xf32, #tpu.memory_space<vmem>>, vector<8x256xf32>,
    %c0_55 = arith.constant 0 : index
    %c0_56 = arith.constant 0 : index
    %97 = vector.load %arg3[%c0_55, %c0_56] : memref<16x73xf32, #tpu.memory_space<vmem>>, vector<8x73xf32>
    %c0_57 = arith.constant 0 : index
    %c0_58 = arith.constant 0 : index
    %98 = vector.load %arg6[%c0_57, %c0_58] : memref<73x256xf32, #tpu.memory_space<vmem>>, vector<73x256xf32>
    %cst_59 = arith.constant dense<0.000000e+00> : vector<8x256xf32>
    %99 = tpu.matmul %97, %98, %cst_59 {dimension_numbers = #tpu.dot_dimension_numbers<[1], [0], [0], [1], [0, 0, 1, 1], [], []>} : vector<8x73xf32>, vector<73x256xf32>, vector<8x256xf32> -> vector<8x256xf32>
    %c0_60 = arith.constant 0 : index
    %c128_61 = arith.constant 128 : index
    %100 = vector.load %arg5[%c0_60, %c128_61] : memref<8x512xf32, #tpu.memory_space<vmem>>, vector<8x256xf32>
    tpu.vector_store %arg5[%c0_60, %c128_61], %99 {strides = array<i32>} : memref<8x512xf32, #tpu.memory_space<vmem>>, vector<8x256xf32>,
    %c0_62 = arith.constant 0 : index
    %c111_63 = arith.constant 111 : index
    %101 = vector.load %arg5[%c0_62, %c111_63] : memref<8x512xf32, #tpu.memory_space<vmem>>, vector<8x256xf32>
    %c0_64 = arith.constant 0 : index
    %c0_65 = arith.constant 0 : index
    %102 = vector.load %arg2[%c0_64, %c0_65] : memref<48x256xf32, #tpu.memory_space<vmem>>, vector<8x256xf32>
    %103 = arith.mulf %101, %102 : vector<8x256xf32>
    %c0_66 = arith.constant 0 : index
    %c0_67 = arith.constant 0 : index
    %104 = vector.load %arg6[%c0_66, %c0_67] : memref<73x256xf32, #tpu.memory_space<vmem>>, vector<8x256xf32>
    tpu.vector_store %arg6[%c0_66, %c0_67], %103 {strides = array<i32>} : memref<73x256xf32, #tpu.memory_space<vmem>>, vector<8x256xf32>,
    %c0_68 = arith.constant 0 : index
    %c112_69 = arith.constant 112 : index
    %105 = vector.load %arg5[%c0_68, %c112_69] : memref<8x512xf32, #tpu.memory_space<vmem>>, vector<8x256xf32>
    %c8_70 = arith.constant 8 : index
    %c0_71 = arith.constant 0 : index
    %106 = vector.load %arg6[%c8_70, %c0_71] : memref<73x256xf32, #tpu.memory_space<vmem>>, vector<8x256xf32>
    tpu.vector_store %arg6[%c8_70, %c0_71], %105 {strides = array<i32>} : memref<73x256xf32, #tpu.memory_space<vmem>>, vector<8x256xf32>,
    %c0_72 = arith.constant 0 : index
    %c113_73 = arith.constant 113 : index
    %107 = vector.load %arg5[%c0_72, %c113_73] : memref<8x512xf32, #tpu.memory_space<vmem>>, vector<8x256xf32>
    %c8_74 = arith.constant 8 : index
    %c0_75 = arith.constant 0 : index
    %108 = vector.load %arg2[%c8_74, %c0_75] : memref<48x256xf32, #tpu.memory_space<vmem>>, vector<8x256xf32>
    %109 = arith.mulf %107, %108 : vector<8x256xf32>
    %c16_76 = arith.constant 16 : index
    %c0_77 = arith.constant 0 : index
    %110 = vector.load %arg6[%c16_76, %c0_77] : memref<73x256xf32, #tpu.memory_space<vmem>>, vector<8x256xf32>
    tpu.vector_store %arg6[%c16_76, %c0_77], %109 {strides = array<i32>} : memref<73x256xf32, #tpu.memory_space<vmem>>, vector<8x256xf32>,
    %c0_78 = arith.constant 0 : index
    %c127_79 = arith.constant 127 : index
    %111 = vector.load %arg5[%c0_78, %c127_79] : memref<8x512xf32, #tpu.memory_space<vmem>>, vector<8x256xf32>
    %c16_80 = arith.constant 16 : index
    %c0_81 = arith.constant 0 : index
    %112 = vector.load %arg2[%c16_80, %c0_81] : memref<48x256xf32, #tpu.memory_space<vmem>>, vector<8x256xf32>
    %113 = arith.mulf %111, %112 : vector<8x256xf32>
    %c24_82 = arith.constant 24 : index
    %c0_83 = arith.constant 0 : index
    %114 = vector.load %arg6[%c24_82, %c0_83] : memref<73x256xf32, #tpu.memory_space<vmem>>, vector<8x256xf32>
    tpu.vector_store %arg6[%c24_82, %c0_83], %113 {strides = array<i32>} : memref<73x256xf32, #tpu.memory_space<vmem>>, vector<8x256xf32>,
    %c0_84 = arith.constant 0 : index
    %c128_85 = arith.constant 128 : index
    %115 = vector.load %arg5[%c0_84, %c128_85] : memref<8x512xf32, #tpu.memory_space<vmem>>, vector<8x256xf32>
    %c32_86 = arith.constant 32 : index
    %c0_87 = arith.constant 0 : index
    %116 = vector.load %arg6[%c32_86, %c0_87] : memref<73x256xf32, #tpu.memory_space<vmem>>, vector<8x256xf32>
    tpu.vector_store %arg6[%c32_86, %c0_87], %115 {strides = array<i32>} : memref<73x256xf32, #tpu.memory_space<vmem>>, vector<8x256xf32>,
    %c0_88 = arith.constant 0 : index
    %c129_89 = arith.constant 129 : index
    %117 = vector.load %arg5[%c0_88, %c129_89] : memref<8x512xf32, #tpu.memory_space<vmem>>, vector<8x256xf32>
    %c24_90 = arith.constant 24 : index
    %c0_91 = arith.constant 0 : index
    %118 = vector.load %arg2[%c24_90, %c0_91] : memref<48x256xf32, #tpu.memory_space<vmem>>, vector<8x256xf32>
    %119 = arith.mulf %117, %118 : vector<8x256xf32>
    %c40_92 = arith.constant 40 : index
    %c0_93 = arith.constant 0 : index
    %120 = vector.load %arg6[%c40_92, %c0_93] : memref<73x256xf32, #tpu.memory_space<vmem>>, vector<8x256xf32>
    tpu.vector_store %arg6[%c40_92, %c0_93], %119 {strides = array<i32>} : memref<73x256xf32, #tpu.memory_space<vmem>>, vector<8x256xf32>,
    %c0_94 = arith.constant 0 : index
    %c143_95 = arith.constant 143 : index
    %121 = vector.load %arg5[%c0_94, %c143_95] : memref<8x512xf32, #tpu.memory_space<vmem>>, vector<8x256xf32>
    %c32_96 = arith.constant 32 : index
    %c0_97 = arith.constant 0 : index
    %122 = vector.load %arg2[%c32_96, %c0_97] : memref<48x256xf32, #tpu.memory_space<vmem>>, vector<8x256xf32>
    %123 = arith.mulf %121, %122 : vector<8x256xf32>
    %c48_98 = arith.constant 48 : index
    %c0_99 = arith.constant 0 : index
    %124 = vector.load %arg6[%c48_98, %c0_99] : memref<73x256xf32, #tpu.memory_space<vmem>>, vector<8x256xf32>
    tpu.vector_store %arg6[%c48_98, %c0_99], %123 {strides = array<i32>} : memref<73x256xf32, #tpu.memory_space<vmem>>, vector<8x256xf32>,
    %c0_100 = arith.constant 0 : index
    %c144_101 = arith.constant 144 : index
    %125 = vector.load %arg5[%c0_100, %c144_101] : memref<8x512xf32, #tpu.memory_space<vmem>>, vector<8x256xf32>
    %c56_102 = arith.constant 56 : index
    %c0_103 = arith.constant 0 : index
    %126 = vector.load %arg6[%c56_102, %c0_103] : memref<73x256xf32, #tpu.memory_space<vmem>>, vector<8x256xf32>
    tpu.vector_store %arg6[%c56_102, %c0_103], %125 {strides = array<i32>} : memref<73x256xf32, #tpu.memory_space<vmem>>, vector<8x256xf32>,
    %c0_104 = arith.constant 0 : index
    %c145_105 = arith.constant 145 : index
    %127 = vector.load %arg5[%c0_104, %c145_105] : memref<8x512xf32, #tpu.memory_space<vmem>>, vector<8x256xf32>
    %c40_106 = arith.constant 40 : index
    %c0_107 = arith.constant 0 : index
    %128 = vector.load %arg2[%c40_106, %c0_107] : memref<48x256xf32, #tpu.memory_space<vmem>>, vector<8x256xf32>
    %129 = arith.mulf %127, %128 : vector<8x256xf32>
    %c64_108 = arith.constant 64 : index
    %c0_109 = arith.constant 0 : index
    %130 = vector.load %arg6[%c64_108, %c0_109] : memref<73x256xf32, #tpu.memory_space<vmem>>, vector<8x256xf32>
    tpu.vector_store %arg6[%c64_108, %c0_109], %129 {strides = array<i32>} : memref<73x256xf32, #tpu.memory_space<vmem>>, vector<8x256xf32>,
    %c8_110 = arith.constant 8 : index
    %c0_111 = arith.constant 0 : index
    %131 = vector.load %arg3[%c8_110, %c0_111] : memref<16x73xf32, #tpu.memory_space<vmem>>, vector<4x73xf32>
    %c0_112 = arith.constant 0 : index
    %c0_113 = arith.constant 0 : index
    %132 = vector.load %arg6[%c0_112, %c0_113] : memref<73x256xf32, #tpu.memory_space<vmem>>, vector<73x256xf32>
    %cst_114 = arith.constant dense<0.000000e+00> : vector<4x256xf32>
    %133 = tpu.matmul %131, %132, %cst_114 {dimension_numbers = #tpu.dot_dimension_numbers<[1], [0], [0], [1], [0, 0, 1, 1], [], []>} : vector<4x73xf32>, vector<73x256xf32>, vector<4x256xf32> -> vector<4x256xf32>
    %c0_115 = arith.constant 0 : index
    %c128_116 = arith.constant 128 : index
    %134 = vector.load %arg5[%c0_115, %c128_116] : memref<8x512xf32, #tpu.memory_space<vmem>>, vector<4x256xf32>
    tpu.vector_store %arg5[%c0_115, %c128_116], %133 {strides = array<i32>} : memref<8x512xf32, #tpu.memory_space<vmem>>, vector<4x256xf32>,
    %c0_117 = arith.constant 0 : index
    %c111_118 = arith.constant 111 : index
    %135 = vector.load %arg5[%c0_117, %c111_118] : memref<8x512xf32, #tpu.memory_space<vmem>>, vector<4x256xf32>
    %c0_119 = arith.constant 0 : index
    %c0_120 = arith.constant 0 : index
    %136 = vector.load %arg2[%c0_119, %c0_120] : memref<48x256xf32, #tpu.memory_space<vmem>>, vector<4x256xf32>
    %137 = arith.mulf %135, %136 : vector<4x256xf32>
    %c0_121 = arith.constant 0 : index
    %c0_122 = arith.constant 0 : index
    %138 = vector.load %arg6[%c0_121, %c0_122] : memref<73x256xf32, #tpu.memory_space<vmem>>, vector<4x256xf32>
    tpu.vector_store %arg6[%c0_121, %c0_122], %137 {strides = array<i32>} : memref<73x256xf32, #tpu.memory_space<vmem>>, vector<4x256xf32>,
    %c0_123 = arith.constant 0 : index
    %c112_124 = arith.constant 112 : index
    %139 = vector.load %arg5[%c0_123, %c112_124] : memref<8x512xf32, #tpu.memory_space<vmem>>, vector<4x256xf32>
    %c4 = arith.constant 4 : index
    %c0_125 = arith.constant 0 : index
    %140 = vector.load %arg6[%c4, %c0_125] : memref<73x256xf32, #tpu.memory_space<vmem>>, vector<4x256xf32>
    tpu.vector_store %arg6[%c4, %c0_125], %139 {strides = array<i32>} : memref<73x256xf32, #tpu.memory_space<vmem>>, vector<4x256xf32>,
    %c0_126 = arith.constant 0 : index
    %c113_127 = arith.constant 113 : index
    %141 = vector.load %arg5[%c0_126, %c113_127] : memref<8x512xf32, #tpu.memory_space<vmem>>, vector<4x256xf32>
    %c8_128 = arith.constant 8 : index
    %c0_129 = arith.constant 0 : index
    %142 = vector.load %arg2[%c8_128, %c0_129] : memref<48x256xf32, #tpu.memory_space<vmem>>, vector<4x256xf32>
    %143 = arith.mulf %141, %142 : vector<4x256xf32>
    %c8_130 = arith.constant 8 : index
    %c0_131 = arith.constant 0 : index
    %144 = vector.load %arg6[%c8_130, %c0_131] : memref<73x256xf32, #tpu.memory_space<vmem>>, vector<4x256xf32>
    tpu.vector_store %arg6[%c8_130, %c0_131], %143 {strides = array<i32>} : memref<73x256xf32, #tpu.memory_space<vmem>>, vector<4x256xf32>,
    %c0_132 = arith.constant 0 : index
    %c127_133 = arith.constant 127 : index
    %145 = vector.load %arg5[%c0_132, %c127_133] : memref<8x512xf32, #tpu.memory_space<vmem>>, vector<4x256xf32>
    %c16_134 = arith.constant 16 : index
    %c0_135 = arith.constant 0 : index
    %146 = vector.load %arg2[%c16_134, %c0_135] : memref<48x256xf32, #tpu.memory_space<vmem>>, vector<4x256xf32>
    %147 = arith.mulf %145, %146 : vector<4x256xf32>
    %c12 = arith.constant 12 : index
    %c0_136 = arith.constant 0 : index
    %148 = vector.load %arg6[%c12, %c0_136] : memref<73x256xf32, #tpu.memory_space<vmem>>, vector<4x256xf32>
    tpu.vector_store %arg6[%c12, %c0_136], %147 {strides = array<i32>} : memref<73x256xf32, #tpu.memory_space<vmem>>, vector<4x256xf32>,
    %c0_137 = arith.constant 0 : index
    %c128_138 = arith.constant 128 : index
    %149 = vector.load %arg5[%c0_137, %c128_138] : memref<8x512xf32, #tpu.memory_space<vmem>>, vector<4x256xf32>
    %c16_139 = arith.constant 16 : index
    %c0_140 = arith.constant 0 : index
    %150 = vector.load %arg6[%c16_139, %c0_140] : memref<73x256xf32, #tpu.memory_space<vmem>>, vector<4x256xf32>
    tpu.vector_store %arg6[%c16_139, %c0_140], %149 {strides = array<i32>} : memref<73x256xf32, #tpu.memory_space<vmem>>, vector<4x256xf32>,
    %c0_141 = arith.constant 0 : index
    %c129_142 = arith.constant 129 : index
    %151 = vector.load %arg5[%c0_141, %c129_142] : memref<8x512xf32, #tpu.memory_space<vmem>>, vector<4x256xf32>
    %c24_143 = arith.constant 24 : index
    %c0_144 = arith.constant 0 : index
    %152 = vector.load %arg2[%c24_143, %c0_144] : memref<48x256xf32, #tpu.memory_space<vmem>>, vector<4x256xf32>
    %153 = arith.mulf %151, %152 : vector<4x256xf32>
    %c20 = arith.constant 20 : index
    %c0_145 = arith.constant 0 : index
    %154 = vector.load %arg6[%c20, %c0_145] : memref<73x256xf32, #tpu.memory_space<vmem>>, vector<4x256xf32>
    tpu.vector_store %arg6[%c20, %c0_145], %153 {strides = array<i32>} : memref<73x256xf32, #tpu.memory_space<vmem>>, vector<4x256xf32>,
    %c0_146 = arith.constant 0 : index
    %c143_147 = arith.constant 143 : index
    %155 = vector.load %arg5[%c0_146, %c143_147] : memref<8x512xf32, #tpu.memory_space<vmem>>, vector<4x256xf32>
    %c32_148 = arith.constant 32 : index
    %c0_149 = arith.constant 0 : index
    %156 = vector.load %arg2[%c32_148, %c0_149] : memref<48x256xf32, #tpu.memory_space<vmem>>, vector<4x256xf32>
    %157 = arith.mulf %155, %156 : vector<4x256xf32>
    %c24_150 = arith.constant 24 : index
    %c0_151 = arith.constant 0 : index
    %158 = vector.load %arg6[%c24_150, %c0_151] : memref<73x256xf32, #tpu.memory_space<vmem>>, vector<4x256xf32>
    tpu.vector_store %arg6[%c24_150, %c0_151], %157 {strides = array<i32>} : memref<73x256xf32, #tpu.memory_space<vmem>>, vector<4x256xf32>,
    %c0_152 = arith.constant 0 : index
    %c144_153 = arith.constant 144 : index
    %159 = vector.load %arg5[%c0_152, %c144_153] : memref<8x512xf32, #tpu.memory_space<vmem>>, vector<4x256xf32>
    %c28 = arith.constant 28 : index
    %c0_154 = arith.constant 0 : index
    %160 = vector.load %arg6[%c28, %c0_154] : memref<73x256xf32, #tpu.memory_space<vmem>>, vector<4x256xf32>
    tpu.vector_store %arg6[%c28, %c0_154], %159 {strides = array<i32>} : memref<73x256xf32, #tpu.memory_space<vmem>>, vector<4x256xf32>,
    %c0_155 = arith.constant 0 : index
    %c145_156 = arith.constant 145 : index
    %161 = vector.load %arg5[%c0_155, %c145_156] : memref<8x512xf32, #tpu.memory_space<vmem>>, vector<4x256xf32>
    %c40_157 = arith.constant 40 : index
    %c0_158 = arith.constant 0 : index
    %162 = vector.load %arg2[%c40_157, %c0_158] : memref<48x256xf32, #tpu.memory_space<vmem>>, vector<4x256xf32>
    %163 = arith.mulf %161, %162 : vector<4x256xf32>
    %c32_159 = arith.constant 32 : index
    %c0_160 = arith.constant 0 : index
    %164 = vector.load %arg6[%c32_159, %c0_160] : memref<73x256xf32, #tpu.memory_space<vmem>>, vector<4x256xf32>
    tpu.vector_store %arg6[%c32_159, %c0_160], %163 {strides = array<i32>} : memref<73x256xf32, #tpu.memory_space<vmem>>, vector<4x256xf32>,
    %c12_161 = arith.constant 12 : index
    %c0_162 = arith.constant 0 : index
    %165 = vector.load %arg3[%c12_161, %c0_162] : memref<16x73xf32, #tpu.memory_space<vmem>>, vector<4x73xf32>
    %c0_163 = arith.constant 0 : index
    %c0_164 = arith.constant 0 : index
    %166 = vector.load %arg6[%c0_163, %c0_164] : memref<73x256xf32, #tpu.memory_space<vmem>>, vector<73x256xf32>
    %cst_165 = arith.constant dense<0.000000e+00> : vector<4x256xf32>
    %167 = tpu.matmul %165, %166, %cst_165 {dimension_numbers = #tpu.dot_dimension_numbers<[1], [0], [0], [1], [0, 0, 1, 1], [], []>} : vector<4x73xf32>, vector<73x256xf32>, vector<4x256xf32> -> vector<4x256xf32>
    %168 = vector.extract_strided_slice %60 {offsets = [0, 0], sizes = [4, 256], strides = [1, 1]} : vector<8x256xf32> to vector<4x256xf32>
    %169 = vector.extract_strided_slice %60 {offsets = [4, 0], sizes = [4, 256], strides = [1, 1]} : vector<8x256xf32> to vector<4x256xf32>
    %170 = arith.subf %168, %169 : vector<4x256xf32>
    %171 = arith.mulf %170, %167 : vector<4x256xf32>
    %172 = arith.mulf %171, %171 : vector<4x256xf32>
    %173 = vector.shape_cast %172 : vector<4x256xf32> to vector<1x4x256xf32>
    %cst_166 = arith.constant dense<0.000000e+00> : vector<1xf32>
    %174 = vector.multi_reduction <add>, %173, %cst_166 [1, 2] : vector<1x4x256xf32> to vector<1xf32>
    %175 = vector.shape_cast %174 : vector<1xf32> to vector<1x1x1xf32>
    %176 = vector.extract %175[0, 0, 0] : f32 from vector<1x1x1xf32>
    %177 = vector.broadcast %38 : f32 to vector<1x128xf32>
    %178 = vector.broadcast %176 : f32 to vector<1x128xf32>
    %179 = tpu.concatenate %177, %178 in 0 : vector<1x128xf32>, vector<1x128xf32> -> vector<2x128xf32>
    %180 = vector.shape_cast %179 : vector<2x128xf32> to vector<1x2x128xf32>
    %c0_167 = arith.constant 0 : index
    %c0_168 = arith.constant 0 : index
    %c0_169 = arith.constant 0 : index
    %181 = vector.load %arg4[%c0_167, %c0_168, %c0_169] : memref<1x2x128xf32, #tpu.memory_space<vmem>>, vector<1x2x128xf32>
    tpu.vector_store %arg4[%c0_167, %c0_168, %c0_169], %180 {strides = array<i32>} : memref<1x2x128xf32, #tpu.memory_space<vmem>>, vector<1x2x128xf32>,
    return
  }
  func.func @transform_0(%arg0: i32) -> (i32, i32, i32) {
    %c0_i32 = arith.constant 0 : i32
    %c0_i32_0 = arith.constant 0 : i32
    %c0_i32_1 = arith.constant 0 : i32
    return %arg0, %c0_i32, %c0_i32_0 : i32, i32, i32
  }
  func.func @transform_1(%arg0: i32) -> (i32, i32) {
    %c0_i32 = arith.constant 0 : i32
    %c0_i32_0 = arith.constant 0 : i32
    %c0_i32_1 = arith.constant 0 : i32
    return %c0_i32, %c0_i32_0 : i32, i32
  }
  func.func @transform_2(%arg0: i32) -> (i32, i32) {
    %c0_i32 = arith.constant 0 : i32
    %c0_i32_0 = arith.constant 0 : i32
    %c0_i32_1 = arith.constant 0 : i32
    return %c0_i32, %c0_i32_0 : i32, i32
  }
  func.func @transform_3(%arg0: i32) -> (i32, i32, i32) {
    %c0_i32 = arith.constant 0 : i32
    %c0_i32_0 = arith.constant 0 : i32
    %c0_i32_1 = arith.constant 0 : i32
    return %arg0, %c0_i32, %c0_i32_0 : i32, i32, i32
  }
}

</mosaic_0001>

<bundles_post_ra>
// kernel: dis_forward.1
= control target key start
LH: loop header
LB: loop body
LE: loop exit
PB: predicated region body
PF: predicated region fallthrough
CT: control target
= control target key end

     0   :  { %s1770_s12 = smov 0   ;;  %s2246_s0 = inlined_call_operand.vmem [shape: f32[2,8,256], index: 0, kind: input, shape index: {}]   ;;  %s2247_s1 = inlined_call_operand.vmem [shape: f32[48,256], index: 1, kind: input, shape index: {}]   ;;  %s2248_s2 = inlined_call_operand.vmem [shape: f32[16,73], index: 2, kind: input, shape index: {}]   ;;  %s2249_s3 = inlined_call_operand.vmem [shape: f32[2,2,128], index: 3, kind: output, shape index: {}]  }
   0x1 LB: > { %s1595_s13 = sadd.s32 4294967295, %s1737_s12   ;;  %p1599_p0 = scmp.ge.s32.totalorder %s1737_s12, 1  ;;  %s1737_s12 = sphi %s1770_s12, %s13_s12  }
   0x2   : > { %p137_p1 = scmp.lt.s32.totalorder %s1737_s12, 3 }
   0x4   : > { %p138_p2 = pnand %p1599_p0, %p137_p1 }
   0x5   : > { %p160_p3 = scmp.lt.s32.totalorder (!%p138_p2), %s1595_s13, 1  ;;  %v365_v2 = vlaneseq (!%p138_p2)  ;;  %v1739_v3 = vmov (!%p138_p2), 1.0   ;;  %vm1740_vm4 = vmmov (!%p138_p2), 1   ;;  %vm374_vm6 = vcmask (!%p138_p2), 64512   ;;  %v1798_v16 = vld [vmem:[%s2247_s1] sm:$0xff] (!%p138_p2)  ;;  %s1742_s20 = smov (!%p138_p2), 111  }
   0x6   : > { %141 = sbr.rel (%p138_p2) target bundleno = 2103 (0x837), region = 32  ;;  %v1741_v15 = vmov (!%p138_p2), 0.0   ;;  %478 = vrot.lane.b32.xlu1 (!%p138_p2), %v1798_v16, %s1742_s20  ;;  %v1805_v17 = vld [vmem:[%s2247_s1 + $0x10] sm:$0xff] (!%p138_p2)  ;;  %v1810_v18 = vld [vmem:[%s2247_s1 + $0x8] sm:$0xff] (!%p138_p2)  ;;  %s1743_s25 = smov (!%p138_p2), 113   ;;  %v1824_v20 = vld [vmem:[%s2247_s1 + $0x18] sm:$0xff] (!%p138_p2) }
   0x7   : > { %vm464_vm0 = vcmp.lt.s32.totalorder (!%p138_p2), %v365_v2, 256  ;;  %v366_v4 = vshrl.u32 (!%p138_p2), %v365_v2, 7  ;;  %v368_v5 = vand.u32 (!%p138_p2), 127, %v365_v2  ;;  %460 = vst [vmem:[#allocation2] sm:$0xff] (!%p138_p2), %v1741_v15  ;;  %461 = vst [vmem:[#allocation2 + $0x18] sm:$0xff] (!%p138_p2), %v1741_v15  ;;  %813 = vmatprep.mubr.f32.mxu1 (!%p138_p2), %v1741_v15  ;;  %v1817_v19 = vld [vmem:[%s2247_s1 + $0x48] sm:$0xff] (!%p138_p2) }
   0x8   : > { %467 = vst.msk [vmem:[#allocation3 + $0x90] ss:$8 sm:$0x3] (!%p138_p2), %vm464_vm0, %v1739_v3  ;;  %s1744_s30 = smov (!%p138_p2), 15   ;;  %v1831_v21 = vld [vmem:[%s2247_s1 + $0x58] sm:$0xff] (!%p138_p2)  ;;  %v1838_v22 = vld [vmem:[%s2247_s1 + $0x20] sm:$0xff] (!%p138_p2) }
   0x9   : > { %vm369_vm1 = vcmp.lt.s32.totalorder (!%p138_p2), %v366_v4, 4  ;;  %vm370_vm2 = vcmp.lt.s32.totalorder (!%p138_p2), %v368_v5, 4  ;;  %s1745_s8 = smov (!%p138_p2), 17   ;;  %s1746_s9 = smov (!%p138_p2), 127   ;;  %v1847_v23 = vld [vmem:[%s2247_s1 + $0x28] sm:$0xff] (!%p138_p2)  ;;  %v1856_v24 = vld [vmem:[%s2247_s1 + $0x30] sm:$0xff] (!%p138_p2) }
   0xa   : > { %vm371_vm3 = vmxor (!%p138_p2), %vm369_vm1, %vm370_vm2  ;;  %480 = vrot.lane.b32.xlu1 (!%p138_p2), %v1810_v18, %s1742_s20  ;;  %s1748_s18 = smov (!%p138_p2), 1   ;;  %v1863_v25 = vld [vmem:[%s2247_s1 + $0x38] sm:$0xff] (!%p138_p2)  ;;  %v1870_v26 = vld [vmem:[%s2247_s1 + $0x40] sm:$0xff] (!%p138_p2)  ;;  %s1749_s27 = smov (!%p138_p2), 112   ;;  %vm482_vm7 = vcmask (!%p138_p2), 908288   ;;  %vm536_vm8 = vcmask (!%p138_p2), 924672  }
   0xb   : > { %vm372_vm5 = vmxor (!%p138_p2), %vm371_vm3, %vm1740_vm4  ;;  %v1877_v27 = vld [vmem:[%s2247_s1 + $0x50] sm:$0xff] (!%p138_p2)  ;;  %vm571_vm9 = vcmask (!%p138_p2), 1039360   ;;  %vm588_vm10 = vcmask (!%p138_p2), 7168   ;;  %vm553_vm11 = vcmask (!%p138_p2), 121856   ;;  %vm499_vm12 = vcmask (!%p138_p2), 138240  }
   0xc   : > { %vm518_vm13 = vcmask (!%p138_p2), 130048   ;;  %vm677_vm14 = vcmask (!%p138_p2), 916480   ;;  %vm742_vm15 = vcmask (!%p138_p2), 1040384   ;;  %vm738_vm1 = vcmask (!%p138_p2), 596992  }
   0xd   : > { %s2253_s13 = smov (!%p160_p3, %s1595_s13), 1  ;;  %vm1977_vm0 = vmpackc.low %vm742_vm15, %vm1740_vm4  ;;  %vm173_vm2 = vcmask 1043456   ;;  %vm216_vm3 = vcmask 1047556  }
   0xe   : > { %s1615_s14 = sshll.u32 %s2253_s13, 4  ;;  %534 = vrot.lane.b32.xlu1 %v1824_v20, %s1743_s25 }
   0xf   : > { %s1784_s17 = scalar_lea.vmem %s2246_s0, %s1615_s14  ;;  %s1747_s14 = smov 16  }
  0x10   : > { %v170_v0 = vld [vmem:[%s1784_s17 + $0x8] sm:$0xff]  ;;  %v169_v1 = vld [vmem:[%s1784_s17] sm:$0xff] }
  0x11   : > { %295 = vmatprep.subr.mxu0 %v170_v0  ;;  %359 = vmatprep.mubr.f32.mxu0 %v170_v0 }
  0x12   : > { %296 = vmatpush1.xpose.msra.mxu0 %v169_v1  ;;  %567 = vrot.lane.b32.xlu1 %v1838_v22, %s1746_s9 }
  0x13   : > { %389 = vmatprep.subr.mxu0 %v170_v0 }
  0x15   : > { %360 = vmatmul.mubr.f32.vlgmr.msra.gmra.mrb[0].mxu0 %v169_v1 }
  0x16   : > { %390 = vmatpush1.msra.mxu0 %v169_v1  ;;  %453 = vmatprep.mubr.f32.mxu0 %v1741_v15 }
  0x17   : > { %569 = vrot.lane.b32.xlu1 %v1847_v23, %s1746_s9 }
  0x1b   : > { %606 = vrot.lane.b32.xlu1 %v1856_v24, %s1748_s18 }
  0x1f   : > { %608 = vrot.lane.b32.xlu1 %v1863_v25, %s1748_s18 }
  0x23   : > { %639 = vrot.lane.b32.xlu1 %v1870_v26, %s1744_s30 }
  0x27   : > { %691 = vrot.lane.b32.xlu1 %v1877_v27, %s1745_s8 }
  0x78   : > { %v479_v29 = vpop.permute.xlu1 %478 }
  0x79   : > { %v487_v30 = vmul.f32 0.0, %v479_v29 }
  0x7b   : > { %493 = vrot.lane.b32.xlu1 %v487_v30, %s1745_s8 }
  0x7c   : > { %v481_v32 = vpop.permute.xlu1 %480 }
  0x7d   : > { %v483_v47 = vsel %vm482_vm7, %v479_v29, %v481_v32 }
  0x80   : > { %v535_v35 = vpop.permute.xlu1 %534 }
  0x84   : > { %v568_v39 = vpop.permute.xlu1 %567 }
  0x85   : > { %v576_v40 = vmul.f32 0.0, %v568_v39 }
  0x89   : > { %v570_v41 = vpop.permute.xlu1 %569 }
  0x8a   : > { %v572_v52 = vsel %vm571_vm9, %v568_v39, %v570_v41 }
  0x8d   : > { %v607_v42 = vpop.permute.xlu1 %606 }
  0x91   : > { %v609_v43 = vpop.permute.xlu1 %608 }
  0x92   : > { %v616_v44 = vmul.f32 0.0, %v609_v43  ;;  %v610_v57 = vsel %vm588_vm10, %v607_v42, %v609_v43 }
  0x95   : > { %v640_v58 = vpop.permute.xlu1 %639 }
  0x99   : > { %v692_v61 = vpop.permute.xlu1 %691 }
  0xe8   : > { %v361_v6 = vpop.f32.mrb[0].mxu0 }
  0xe9   : > { %v373_v7 = vsel %vm372_vm5, %v361_v6, -1e+30  ;;  %v363_v8 = vpop.f32.mrb[1].mxu0 }
  0xea   : > { %v375_v9 = vsel %vm374_vm6, %v373_v7, -inf }
  0xeb   : > { %376 = vmax.xlane.f32.xlu0 %v375_v9 }
  0xed   : > { %v494_v5 = vpop.permute.xlu1 %493 }
 0x178   : > { %v377_v10 = vpop.xlane.xlu0 %376 }
 0x179   : > { %v378_v11 = vsub.f32 %v373_v7, %v377_v10 }
 0x17b   : > { %v379_v12 = vmul.f32 1.442695, %v378_v11 }
 0x17d   : > { %1705 = vpow2.f32 %v379_v12 }
 0x187   : > { %v1706_v13 = vpop.eup %1705 }
 0x188   : > { %v381_v14 = vsel %vm374_vm6, %v1706_v13, 0.0 }
 0x189   : > { %382 = vadd.xlane.f32.xlu0 %v381_v14 }
 0x19f   : > { %532 = vrot.lane.b32.xlu0 %v1805_v17, %s1743_s25 }
 0x1a3   : > { %641 = vrot.lane.b32.xlu0 %v1817_v19, %s1744_s30 }
 0x1a7   : > { %693 = vrot.lane.b32.xlu0 %v1831_v21, %s1745_s8 }
 0x1ab   : > { %512 = vrot.lane.b32.xlu0 %v1741_v15, %s1747_s14 }
 0x1af   : > { %582 = vrot.lane.b32.xlu0 %v576_v40, %s1748_s18 }
 0x1b3   : > { %624 = vrot.lane.b32.xlu0 %v616_v44, %s1746_s9 }
 0x216   : > { %v383_v28 = vpop.xlane.xlu0 %382 }
 0x217   : > { %1707 = vrcp.f32 %v383_v28 }
 0x21a   : > { %v533_v31 = vpop.permute.xlu0 %532 }
 0x21b   : > { %v541_v33 = vmul.f32 0.0, %v533_v31  ;;  %v537_v49 = vsel %vm536_vm8, %v533_v31, %v535_v35 }
 0x21d   : > { %547 = vrot.lane.b32.xlu1 %v541_v33, %s1744_s30 }
 0x21e   : > { %v642_v34 = vpop.permute.xlu0 %641 }
 0x21f   : > { %v649_v36 = vmul.f32 0.0, %v642_v34  ;;  %v643_v63 = vsel %vm553_vm11, %v640_v58, %v642_v34 }
 0x221   : > { %v1708_v37 = vpop.eup %1707  ;;  %657 = vrot.lane.b32.xlu1 %v649_v36, %s1743_s25 }
 0x222   : > { %v385_v38 = vmul.f32 %v1708_v37, %v1706_v13  ;;  %v694_v62 = vpop.permute.xlu0 %693 }
 0x223   : > { %v695_v1 = vsel %vm499_vm12, %v692_v61, %v694_v62  ;;  %v701_v2 = vmul.f32 0.0, %v694_v62 }
 0x224   : > { %1603 = vmatmul.mubr.msk.f32.vlgmr.msra.gmra.mrb[2].mxu0 %vm374_vm6, %v385_v38 }
 0x225   : > { %1154 = vmatprep.mubr.f32.mxu0 %v1741_v15  ;;  %675 = vrot.lane.b32.xlu1 %v1741_v15, %s1749_s27 }
 0x226   : > { %v513_v7 = vpop.permute.xlu0 %512 }
 0x22a   : > { %v583_v9 = vpop.permute.xlu0 %582 }
 0x22e   : > { %v625_v11 = vpop.permute.xlu0 %624 }
 0x28f   : > { %v548_v6 = vpop.permute.xlu1 %547 }
 0x293   : > { %v658_v8 = vpop.permute.xlu1 %657 }
 0x297   : > { %v676_v10 = vpop.permute.xlu1 %675 }
 0x2f7   : > { %v1890_v45 = vpop.f32.mrb[2].mxu0 }
 0x2f8   : > { %v1892_v46 = vpop.f32.mrb[3].mxu0  ;;  %514 = vrot.lane.b32.xlu1 %v1890_v45, %s1747_s14  ;;  %v488_v48 = vmul.f32 %v483_v47, %v1890_v45  ;;  %v542_v50 = vmul.f32 %v537_v49, %v1890_v45  ;;  %v577_v53 = vmul.f32 %v572_v52, %v1890_v45  ;;  %v614_v55 = vmul.f32 %v607_v42, %v1890_v45  ;;  %v737_v52 = vld [vmem:[#allocation3 + $0x98] sm:$0x1] }
 0x2f9   : > { %516 = vrot.lane.b32.xlu0 %v1892_v46, %s1747_s14  ;;  %v489_v51 = vmul.f32 %v481_v32, %v1892_v46  ;;  %v543_v54 = vmul.f32 %v535_v35, %v1892_v46  ;;  %v578_v56 = vmul.f32 %v570_v41, %v1892_v46  ;;  %v615_v59 = vmul.f32 %v610_v57, %v1892_v46  ;;  %v736_v57 = vld [vmem:[#allocation3 + $0x90] sm:$0x1] }
 0x2fa   : > { %v647_v60 = vmul.f32 %v640_v58, %v1890_v45  ;;  %v648_v0 = vmul.f32 %v643_v63, %v1892_v46  ;;  %v700_v3 = vmul.f32 %v695_v1, %v1892_v46  ;;  %v699_v4 = vmul.f32 %v692_v61, %v1890_v45 }
 0x2fc   : > { %495 = vrot.lane.b32.xlu1 %v488_v48, %s1745_s8 }
 0x2fd   : > { %673 = vrot.lane.b32.xlu0 %v1892_v46, %s1749_s27 }
 0x300   : > { %549 = vrot.lane.b32.xlu1 %v542_v50, %s1744_s30 }
 0x301   : > { %497 = vrot.lane.b32.xlu0 %v489_v51, %s1745_s8 }
 0x304   : > { %584 = vrot.lane.b32.xlu1 %v577_v53, %s1748_s18 }
 0x305   : > { %551 = vrot.lane.b32.xlu0 %v543_v54, %s1744_s30 }
 0x308   : > { %620 = vrot.lane.b32.xlu1 %v614_v55, %s1746_s9 }
 0x309   : > { %586 = vrot.lane.b32.xlu0 %v578_v56, %s1748_s18 }
 0x30c   : > { %622 = vrot.lane.b32.xlu1 %v615_v59, %s1746_s9 }
 0x30d   : > { %653 = vrot.lane.b32.xlu0 %v647_v60, %s1743_s25 }
 0x310   : > { %671 = vrot.lane.b32.xlu1 %v1890_v45, %s1749_s27 }
 0x311   : > { %655 = vrot.lane.b32.xlu0 %v648_v0, %s1743_s25  ;;  %v717_v0 = vld [vmem:[%s2248_s2] sm:$0xff] }
 0x314   : > { %709 = vrot.lane.b32.xlu1 %v701_v2, %s1742_s20 }
 0x315   : > { %707 = vrot.lane.b32.xlu0 %v700_v3, %s1742_s20 }
 0x318   : > { %829 = vrot.lane.b32.xlu1 %v1798_v16, %s1742_s20 }
 0x319   : > { %705 = vrot.lane.b32.xlu0 %v699_v4, %s1742_s20 }
 0x31c   : > { %880 = vrot.lane.b32.xlu1 %v1805_v17, %s1743_s25 }
 0x31d   : > { %831 = vrot.lane.b32.xlu0 %v1810_v18, %s1742_s20 }
 0x320   : > { %913 = vrot.lane.b32.xlu1 %v1838_v22, %s1746_s9 }
 0x321   : > { %882 = vrot.lane.b32.xlu0 %v1824_v20, %s1743_s25 }
 0x324   : > { %950 = vrot.lane.b32.xlu1 %v1856_v24, %s1748_s18 }
 0x325   : > { %915 = vrot.lane.b32.xlu0 %v1847_v23, %s1746_s9 }
 0x328   : > { %983 = vrot.lane.b32.xlu1 %v1870_v26, %s1744_s30 }
 0x329   : > { %952 = vrot.lane.b32.xlu0 %v1863_v25, %s1748_s18 }
 0x32c   : > { %1034 = vrot.lane.b32.xlu1 %v1877_v27, %s1745_s8 }
 0x32d   : > { %985 = vrot.lane.b32.xlu0 %v1817_v19, %s1744_s30 }
 0x331   : > { %1036 = vrot.lane.b32.xlu0 %v1831_v21, %s1745_s8 }
 0x335   : > { %861 = vrot.lane.b32.xlu0 %v1741_v15, %s1747_s14 }
 0x36a   : > { %v515_v12 = vpop.permute.xlu1 %514 }
 0x36b   : > { %v517_v13 = vpop.permute.xlu0 %516  ;;  %v519_v22 = vsel %vm518_vm13, %v513_v7, %v515_v12 }
 0x36c   : > { %v520_v20 = vsel %vm518_vm13, %v515_v12, %v517_v13 }
 0x36e   : > { %v496_v14 = vpop.permute.xlu1 %495 }
 0x36f   : > { %v674_v16 = vpop.permute.xlu0 %673  ;;  %v500_v18 = vsel %vm499_vm12, %v494_v5, %v496_v14 }
 0x370   : > { %v1618_v25 = vpack.c.bf16 %v519_v22, %v500_v18  ;;  %v679_v44 = vsel %vm677_vm14, %v674_v16, %v676_v10 }
 0x372   : > { %v550_v17 = vpop.permute.xlu1 %549 }
 0x373   : > { %v498_v19 = vpop.permute.xlu0 %497  ;;  %v554_v32 = vsel %vm553_vm11, %v548_v6, %v550_v17 }
 0x374   : > { %v501_v21 = vsel %vm499_vm12, %v496_v14, %v498_v19 }
 0x375   : > { %v1616_v23 = vpack.c.bf16 %v520_v20, %v501_v21 }
 0x376   : > { %v585_v24 = vpop.permute.xlu1 %584 }
 0x377   : > { %v552_v26 = vpop.permute.xlu0 %551  ;;  %1617 = vmatprep.subr.bf16.mxu1 %v1616_v23  ;;  %v589_v28 = vsel %vm588_vm10, %v583_v9, %v585_v24 }
 0x378   : > { %1619 = vmatpush1.bf16.msra.mxu1 %v1618_v25  ;;  %v555_v30 = vsel %vm553_vm11, %v550_v17, %v552_v26  ;;  %v1622_v35 = vpack.c.bf16 %v589_v28, %v554_v32 }
 0x37a   : > { %v621_v27 = vpop.permute.xlu1 %620 }
 0x37b   : > { %v587_v29 = vpop.permute.xlu0 %586 }
 0x37c   : > { %v590_v31 = vsel %vm588_vm10, %v585_v24, %v587_v29 }
 0x37d   : > { %v1620_v33 = vpack.c.bf16 %v590_v31, %v555_v30 }
 0x37e   : > { %v623_v34 = vpop.permute.xlu1 %622 }
 0x37f   : > { %v626_v36 = vsel %vm571_vm9, %v621_v27, %v623_v34  ;;  %v627_v37 = vsel %vm571_vm9, %v623_v34, %v625_v11  ;;  %v654_v38 = vpop.permute.xlu0 %653  ;;  %1621 = vmatprep.subr.bf16.mxu1 %v1620_v33 }
 0x380   : > { %1623 = vmatpush1.bf16.msra.mxu1 %v1622_v35  ;;  %v1624_v39 = vpack.c.bf16 %v627_v37, %v1892_v46  ;;  %v1626_v41 = vpack.c.bf16 %v626_v36, %v1890_v45  ;;  %v1253_v35 = vld [vmem:[%s2247_s1 + $0x20] sm:$0xf] }
 0x381   : > { %v1166_v37 = vld [vmem:[%s2247_s1] sm:$0xf] }
 0x382   : > { %v672_v40 = vpop.permute.xlu1 %671  ;;  %1625 = vmatprep.subr.bf16.mxu1 %v1624_v39  ;;  %v1220_v39 = vld [vmem:[%s2247_s1 + $0x10] sm:$0xf] }
 0x383   : > { %v678_v42 = vsel %vm677_vm14, %v672_v40, %v674_v16  ;;  %v656_v43 = vpop.permute.xlu0 %655  ;;  %v1167_v40 = vld [vmem:[%s2247_s1 + $0x8] sm:$0xf] }
 0x384   : > { %v659_v47 = vsel %vm536_vm8, %v654_v38, %v656_v43  ;;  %v660_v48 = vsel %vm536_vm8, %v656_v43, %v658_v8  ;;  %1627 = vmatpush1.bf16.msra.mxu1 %v1626_v41  ;;  %v1254_v38 = vld [vmem:[%s2247_s1 + $0x28] sm:$0xf]  ;;  %v1293_v41 = vld [vmem:[%s2247_s1 + $0x30] sm:$0xf]  ;;  %v1329_v43 = vld [vmem:[%s2247_s1 + $0x40] sm:$0xf] }
 0x385   : > { %v1628_v49 = vpack.c.bf16 %v679_v44, %v660_v48  ;;  %v1630_v50 = vpack.c.bf16 %v678_v42, %v659_v47  ;;  %v1221_v42 = vld [vmem:[%s2247_s1 + $0x18] sm:$0xf]  ;;  %v1383_v47 = vld [vmem:[%s2247_s1 + $0x50] sm:$0xf]  ;;  %v1330_v48 = vld [vmem:[%s2247_s1 + $0x48] sm:$0xf] }
 0x386   : > { %v710_v51 = vpop.permute.xlu1 %709  ;;  %v1294_v44 = vld [vmem:[%s2247_s1 + $0x38] sm:$0xf] }
 0x387   : > { %v708_v53 = vpop.permute.xlu0 %707  ;;  %1629 = vmatprep.subr.bf16.mxu1 %v1628_v49  ;;  %v1384_v49 = vld [vmem:[%s2247_s1 + $0x58] sm:$0xf] }
 0x388   : > { %v712_v55 = vsel %vm482_vm7, %v708_v53, %v710_v51  ;;  %1631 = vmatpush1.bf16.msra.mxu1 %v1630_v50  ;;  %v1196_v50 = vld [vmem:[#allocation2] sm:$0xf] }
 0x389   : > { %v1632_v56 = vpack.c.bf16 %v737_v52, %v712_v55  ;;  %v1202_v51 = vrot.slane %v1196_v50, 4 }
 0x38a   : > { %v830_v58 = vpop.permute.xlu1 %829 }
 0x38b   : > { %v706_v59 = vpop.permute.xlu0 %705  ;;  %1634 = vmatprep.subr.msk.bf16.mxu1 %vm1977_vm0, %v1632_v56  ;;  %v837_v60 = vmul.f32 0.0, %v830_v58 }
 0x38c   : > { %v711_v61 = vsel %vm482_vm7, %v706_v59, %v708_v53 }
 0x38d   : > { %v1635_v62 = vpack.c.bf16 %v736_v57, %v711_v61  ;;  %843 = vrot.lane.b32.xlu1 %v837_v60, %s1745_s8 }
 0x38e   : > { %v881_v63 = vpop.permute.xlu1 %880 }
 0x38f   : > { %1637 = vmatpush1.bf16.msk.msra.mxu1 %vm1977_vm0, %v1635_v62  ;;  %v832_v1 = vpop.permute.xlu0 %831  ;;  %v888_v2 = vmul.f32 0.0, %v881_v63 }
 0x390   : > { %v833_v12 = vsel %vm482_vm7, %v830_v58, %v832_v1 }
 0x391   : > { %894 = vrot.lane.b32.xlu1 %v888_v2, %s1744_s30 }
 0x392   : > { %1606 = vmatmul.mubr.msk.f32.vlgmr.msra.gmra.mrb[0].mxu1 %vm738_vm1, %v717_v0  ;;  %v914_v3 = vpop.permute.xlu1 %913 }
 0x393   : > { %v883_v4 = vpop.permute.xlu0 %882  ;;  %v921_v5 = vmul.f32 0.0, %v914_v3  ;;  %1507 = vmatprep.mubr.f32.mxu1 %v1741_v15 }
 0x394   : > { %v884_v13 = vsel %vm536_vm8, %v881_v63, %v883_v4 }
 0x395   : > { %927 = vrot.lane.b32.xlu0 %v921_v5, %s1748_s18 }
 0x396   : > { %v951_v11 = vpop.permute.xlu1 %950 }
 0x397   : > { %v916_v6 = vpop.permute.xlu0 %915 }
 0x398   : > { %v917_v16 = vsel %vm571_vm9, %v914_v3, %v916_v6 }
 0x39a   : > { %v984_v26 = vpop.permute.xlu1 %983 }
 0x39b   : > { %v953_v7 = vpop.permute.xlu0 %952 }
 0x39c   : > { %v960_v8 = vmul.f32 0.0, %v953_v7  ;;  %v954_v19 = vsel %vm588_vm10, %v951_v11, %v953_v7 }
 0x39e   : > { %968 = vrot.lane.b32.xlu0 %v960_v8, %s1746_s9  ;;  %v1035_v28 = vpop.permute.xlu1 %1034 }
 0x39f   : > { %v986_v9 = vpop.permute.xlu0 %985 }
 0x3a0   : > { %v993_v10 = vmul.f32 0.0, %v986_v9  ;;  %v987_v30 = vsel %vm553_vm11, %v984_v26, %v986_v9 }
 0x3a2   : > { %1001 = vrot.lane.b32.xlu1 %v993_v10, %s1743_s25 }
 0x3a3   : > { %v1037_v29 = vpop.permute.xlu0 %1036 }
 0x3a4   : > { %v1038_v32 = vsel %vm499_vm12, %v1035_v28, %v1037_v29  ;;  %v1044_v33 = vmul.f32 0.0, %v1037_v29 }
 0x3a6   : > { %1019 = vrot.lane.b32.xlu1 %v1741_v15, %s1749_s27 }
 0x3a7   : > { %v862_v55 = vpop.permute.xlu0 %861 }
 0x3ff   : > { %v844_v52 = vpop.permute.xlu1 %843 }
 0x403   : > { %v895_v53 = vpop.permute.xlu1 %894 }
 0x407   : > { %v928_v57 = vpop.permute.xlu0 %927 }
 0x410   : > { %v969_v59 = vpop.permute.xlu0 %968 }
 0x414   : > { %v1002_v56 = vpop.permute.xlu1 %1001 }
 0x418   : > { %v1020_v58 = vpop.permute.xlu1 %1019 }
 0x465   : > { %v2001_v14 = vpop.f32.mrb[0].mxu1 }
 0x466   : > { %820 = vst [vmem:[#allocation2 + $0x8] sm:$0xff] %v2001_v14  ;;  %v2005_v17 = vpop.f32.mrb[1].mxu1  ;;  %863 = vrot.lane.b32.xlu1 %v2001_v14, %s1747_s14  ;;  %v838_v18 = vmul.f32 %v833_v12, %v2001_v14  ;;  %v889_v15 = vmul.f32 %v884_v13, %v2001_v14  ;;  %941 = vst [vmem:[#allocation3 + $0x40] sm:$0xff] %v2001_v14  ;;  %v922_v20 = vmul.f32 %v917_v16, %v2001_v14 }
 0x467   : > { %821 = vst [vmem:[#allocation2 + $0x10] sm:$0xff] %v2005_v17  ;;  %865 = vrot.lane.b32.xlu0 %v2005_v17, %s1747_s14  ;;  %942 = vst [vmem:[#allocation3 + $0x48] sm:$0xff] %v2005_v17  ;;  %v959_v21 = vmul.f32 %v954_v19, %v2005_v17  ;;  %v839_v22 = vmul.f32 %v832_v1, %v2005_v17  ;;  %v890_v23 = vmul.f32 %v883_v4, %v2005_v17 }
 0x468   : > { %v958_v24 = vmul.f32 %v951_v11, %v2001_v14  ;;  %v923_v25 = vmul.f32 %v916_v6, %v2005_v17  ;;  %v991_v27 = vmul.f32 %v984_v26, %v2001_v14  ;;  %v992_v31 = vmul.f32 %v987_v30, %v2005_v17 }
 0x469   : > { %v1043_v34 = vmul.f32 %v1038_v32, %v2005_v17  ;;  %v1042_v36 = vmul.f32 %v1035_v28, %v2001_v14 }
 0x46a   : > { %845 = vrot.lane.b32.xlu1 %v838_v18, %s1745_s8 }
 0x46b   : > { %1017 = vrot.lane.b32.xlu0 %v2005_v17, %s1749_s27 }
 0x46e   : > { %896 = vrot.lane.b32.xlu1 %v889_v15, %s1744_s30 }
 0x46f   : > { %847 = vrot.lane.b32.xlu0 %v839_v22, %s1745_s8 }
 0x472   : > { %929 = vrot.lane.b32.xlu1 %v922_v20, %s1748_s18 }
 0x473   : > { %898 = vrot.lane.b32.xlu0 %v890_v23, %s1744_s30 }
 0x476   : > { %964 = vrot.lane.b32.xlu1 %v958_v24, %s1746_s9 }
 0x477   : > { %931 = vrot.lane.b32.xlu0 %v923_v25, %s1748_s18 }
 0x47a   : > { %966 = vrot.lane.b32.xlu1 %v959_v21, %s1746_s9 }
 0x47b   : > { %997 = vrot.lane.b32.xlu0 %v991_v27, %s1743_s25 }
 0x47e   : > { %1015 = vrot.lane.b32.xlu1 %v2001_v14, %s1749_s27 }
 0x47f   : > { %999 = vrot.lane.b32.xlu0 %v992_v31, %s1743_s25 }
 0x482   : > { %1052 = vrot.lane.b32.xlu1 %v1044_v33, %s1742_s20 }
 0x483   : > { %1050 = vrot.lane.b32.xlu0 %v1043_v34, %s1742_s20 }
 0x486   : > { %1257 = vrot.lane.b32.xlu1 %v1253_v35, %s1746_s9  ;;  %v1080_v35 = vld [vmem:[#allocation3 + $0x98] sm:$0x1] }
 0x487   : > { %1048 = vrot.lane.b32.xlu0 %v1042_v36, %s1742_s20 }
 0x48a   : > { %1170 = vrot.lane.b32.xlu1 %v1166_v37, %s1742_s20 }
 0x48b   : > { %1259 = vrot.lane.b32.xlu0 %v1254_v38, %s1746_s9  ;;  %v1079_v38 = vld [vmem:[#allocation3 + $0x90] sm:$0x1] }
 0x48e   : > { %1224 = vrot.lane.b32.xlu1 %v1220_v39, %s1743_s25 }
 0x48f   : > { %1172 = vrot.lane.b32.xlu0 %v1167_v40, %s1742_s20 }
 0x492   : > { %1297 = vrot.lane.b32.xlu1 %v1293_v41, %s1748_s18 }
 0x493   : > { %1226 = vrot.lane.b32.xlu0 %v1221_v42, %s1743_s25 }
 0x496   : > { %1333 = vrot.lane.b32.xlu1 %v1329_v43, %s1744_s30  ;;  %v1163_v43 = vld [vmem:[#allocation2] sm:$0xf] }
 0x497   : > { %1299 = vrot.lane.b32.xlu0 %v1294_v44, %s1748_s18 }
 0x49a   : > { %1387 = vrot.lane.b32.xlu1 %v1383_v47, %s1745_s8 }
 0x49b   : > { %1335 = vrot.lane.b32.xlu0 %v1330_v48, %s1744_s30 }
 0x49f   : > { %1389 = vrot.lane.b32.xlu0 %v1384_v49, %s1745_s8  ;;  %v1060_v49 = vld [vmem:[%s2248_s2 + $0x8] sm:$0xf] }
 0x4a3   : > { %1205 = vrot.lane.b32.xlu0 %v1202_v51, %s1747_s14 }
 0x4d8   : > { %v864_v60 = vpop.permute.xlu1 %863 }
 0x4d9   : > { %v867_v61 = vsel %vm518_vm13, %v862_v55, %v864_v60  ;;  %v866_v62 = vpop.permute.xlu0 %865 }
 0x4da   : > { %871 = vst [vmem:[#allocation3 + $0x10] sm:$0xff] %v867_v61  ;;  %v868_v63 = vsel %vm518_vm13, %v864_v60, %v866_v62  ;;  %v1328_v62 = vld [vmem:[#allocation2 + $0x18] sm:$0xf] }
 0x4db   : > { %872 = vst [vmem:[#allocation3 + $0x18] sm:$0xff] %v868_v63 }
 0x4dc   : > { %v846_v0 = vpop.permute.xlu1 %845 }
 0x4dd   : > { %v849_v1 = vsel %vm499_vm12, %v844_v52, %v846_v0  ;;  %v1018_v2 = vpop.permute.xlu0 %1017  ;;  %v1217_v52 = vld [vmem:[#allocation2] sm:$0xf] }
 0x4de   : > { %853 = vst [vmem:[#allocation3] sm:$0xff] %v849_v1  ;;  %v1022_v3 = vsel %vm677_vm14, %v1018_v2, %v1020_v58  ;;  %v1640_v10 = vpack.c.bf16 %v867_v61, %v849_v1  ;;  %v1292_v58 = vld [vmem:[#allocation2 + $0x18] sm:$0xf] }
 0x4df   : > { %v1361_v1 = vld [vmem:[#allocation2 + $0x18] sm:$0xf] }
 0x4e0   : > { %v897_v4 = vpop.permute.xlu1 %896 }
 0x4e1   : > { %v900_v5 = vsel %vm553_vm11, %v895_v53, %v897_v4  ;;  %v848_v6 = vpop.permute.xlu0 %847 }
 0x4e2   : > { %904 = vst [vmem:[#allocation3 + $0x20] sm:$0xff] %v900_v5  ;;  %v850_v7 = vsel %vm499_vm12, %v846_v0, %v848_v6 }
 0x4e3   : > { %854 = vst [vmem:[#allocation3 + $0x8] sm:$0xff] %v850_v7  ;;  %v1638_v8 = vpack.c.bf16 %v868_v63, %v850_v7 }
 0x4e4   : > { %v930_v9 = vpop.permute.xlu1 %929 }
 0x4e5   : > { %v933_v11 = vsel %vm588_vm10, %v928_v57, %v930_v9  ;;  %v899_v12 = vpop.permute.xlu0 %898  ;;  %1639 = vmatprep.subr.bf16.mxu0 %v1638_v8 }
 0x4e6   : > { %937 = vst [vmem:[#allocation3 + $0x30] sm:$0xff] %v933_v11  ;;  %v901_v13 = vsel %vm553_vm11, %v897_v4, %v899_v12  ;;  %1641 = vmatpush1.bf16.msra.mxu0 %v1640_v10  ;;  %v1644_v21 = vpack.c.bf16 %v933_v11, %v900_v5 }
 0x4e7   : > { %905 = vst [vmem:[#allocation3 + $0x28] sm:$0xff] %v901_v13 }
 0x4e8   : > { %v965_v16 = vpop.permute.xlu1 %964 }
 0x4e9   : > { %v932_v18 = vpop.permute.xlu0 %931 }
 0x4ea   : > { %v934_v15 = vsel %vm588_vm10, %v930_v9, %v932_v18 }
 0x4eb   : > { %938 = vst [vmem:[#allocation3 + $0x38] sm:$0xff] %v934_v15  ;;  %v1642_v19 = vpack.c.bf16 %v934_v15, %v901_v13 }
 0x4ec   : > { %v967_v20 = vpop.permute.xlu1 %966 }
 0x4ed   : > { %v2105_v22 = vsel %vm571_vm9, %v965_v16, %v967_v20  ;;  %v2108_v23 = vsel %vm571_vm9, %v967_v20, %v969_v59  ;;  %v998_v24 = vpop.permute.xlu0 %997  ;;  %1643 = vmatprep.subr.bf16.mxu0 %v1642_v19 }
 0x4ee   : > { %1645 = vmatpush1.bf16.msra.mxu0 %v1644_v21  ;;  %v1646_v25 = vpack.c.bf16 %v2108_v23, %v2005_v17  ;;  %v1648_v27 = vpack.c.bf16 %v2105_v22, %v2001_v14  ;;  %v1250_v14 = vld [vmem:[#allocation2] sm:$0xf] }
 0x4f0   : > { %v1016_v26 = vpop.permute.xlu1 %1015  ;;  %1647 = vmatprep.subr.bf16.mxu0 %v1646_v25 }
 0x4f1   : > { %v1021_v28 = vsel %vm677_vm14, %v1016_v26, %v1018_v2  ;;  %v1000_v29 = vpop.permute.xlu0 %999  ;;  %v1367_v2 = vrot.slane %v1361_v1, 4 }
 0x4f2   : > { %v1003_v30 = vsel %vm536_vm8, %v998_v24, %v1000_v29  ;;  %v1004_v31 = vsel %vm536_vm8, %v1000_v29, %v1002_v56  ;;  %1649 = vmatpush1.bf16.msra.mxu0 %v1648_v27 }
 0x4f3   : > { %v2117_v32 = vpack.c.bf16 %v1022_v3, %v1004_v31  ;;  %v2119_v33 = vpack.c.bf16 %v1021_v28, %v1003_v30 }
 0x4f4   : > { %v1053_v34 = vpop.permute.xlu1 %1052 }
 0x4f5   : > { %v1051_v17 = vpop.permute.xlu0 %1050  ;;  %1651 = vmatprep.subr.bf16.mxu0 %v2117_v32 }
 0x4f6   : > { %v2123_v36 = vsel %vm482_vm7, %v1051_v17, %v1053_v34  ;;  %1653 = vmatpush1.bf16.msra.mxu0 %v2119_v33 }
 0x4f7   : > { %v1654_v37 = vpack.c.bf16 %v1080_v35, %v2123_v36 }
 0x4f8   : > { %v2127_v39 = vpop.permute.xlu1 %1257 }
 0x4f9   : > { %v1049_v40 = vpop.permute.xlu0 %1048  ;;  %1656 = vmatprep.subr.msk.bf16.mxu0 %vm1977_vm0, %v1654_v37  ;;  %v1265_v41 = vmul.f32 %v2127_v39, %v1250_v14 }
 0x4fa   : > { %v2133_v42 = vsel %vm482_vm7, %v1049_v40, %v1051_v17 }
 0x4fb   : > { %v1657_v44 = vpack.c.bf16 %v1079_v38, %v2133_v42  ;;  %v1271_v47 = vrot.slane %v1265_v41, 4 }
 0x4fc   : > { %v1171_v48 = vpop.permute.xlu1 %1170 }
 0x4fd   : > { %1659 = vmatpush1.bf16.msk.msra.mxu0 %vm1977_vm0, %v1657_v44  ;;  %v2141_v50 = vpop.permute.xlu0 %1259  ;;  %v1178_v51 = vmul.f32 %v1171_v48, %v1163_v43  ;;  %1274 = vrot.lane.b32.xlu0 %v1271_v47, %s1748_s18 }
 0x4fe   : > { %v1261_v37 = vsel %vm571_vm9, %v2127_v39, %v2141_v50 }
 0x4ff   : > { %1184 = vrot.lane.b32.xlu1 %v1178_v51, %s1745_s8 }
 0x500   : > { %1609 = vmatmul.mubr.msk.f32.vlgmr.msra.gmra.mrb[4].mxu0 %vm738_vm1, %v1060_v49  ;;  %v1225_v53 = vpop.permute.xlu1 %1224 }
 0x501   : > { %v1173_v55 = vpop.permute.xlu0 %1172  ;;  %v1232_v56 = vmul.f32 %v1225_v53, %v1217_v52 }
 0x502   : > { %v1174_v5 = vsel %vm482_vm7, %v1171_v48, %v1173_v55 }
 0x503   : > { %1238 = vrot.lane.b32.xlu1 %v1232_v56, %s1744_s30 }
 0x504   : > { %v1298_v11 = vpop.permute.xlu1 %1297 }
 0x505   : > { %v1227_v57 = vpop.permute.xlu0 %1226 }
 0x506   : > { %v1228_v24 = vsel %vm536_vm8, %v1225_v53, %v1227_v57 }
 0x508   : > { %v1334_v25 = vpop.permute.xlu1 %1333 }
 0x509   : > { %v2147_v59 = vpop.permute.xlu0 %1299 }
 0x50a   : > { %v1307_v60 = vmul.f32 %v2147_v59, %v1292_v58 }
 0x50c   : > { %v1313_v61 = vrot.slane %v1307_v60, 4  ;;  %v1388_v38 = vpop.permute.xlu1 %1387 }
 0x50d   : > { %v1336_v63 = vpop.permute.xlu0 %1335 }
 0x50e   : > { %1318 = vrot.lane.b32.xlu0 %v1313_v61, %s1746_s9  ;;  %v1343_v0 = vmul.f32 %v1336_v63, %v1328_v62  ;;  %v1337_v28 = vsel %vm553_vm11, %v1334_v25, %v1336_v63  ;;  %v1382_v63 = vld [vmem:[#allocation2 + $0x18] sm:$0xf] }
 0x511   : > { %v1390_v40 = vpop.permute.xlu0 %1389 }
 0x512   : > { %1351 = vrot.lane.b32.xlu0 %v1343_v0, %s1743_s25  ;;  %v1391_v49 = vsel %vm499_vm12, %v1388_v38, %v1390_v40  ;;  %v1397_v0 = vmul.f32 %v1390_v40, %v1382_v63 }
 0x515   : > { %v1206_v1 = vpop.permute.xlu0 %1205 }
 0x516   : > { %1372 = vrot.lane.b32.xlu0 %v1367_v2, %s1749_s27 }
 0x5d3   : > { %v1156_v3 = vpop.f32.mrb[4].mxu0 }
 0x5d4   : > { %1161 = vst [vmem:[#allocation2 + $0x8] sm:$0xf] %v1156_v3  ;;  %v1158_v4 = vpop.f32.mrb[5].mxu0  ;;  %v1185_v3 = vpop.permute.xlu1 %1184 }
 0x5d5   : > { %1162 = vst [vmem:[#allocation2 + $0x10] sm:$0xf] %v1158_v4 }
 0x5db   : > { %v1164_v6 = vld [vmem:[#allocation2 + $0x8] sm:$0xf] }
 0x5dc   : > { %v1179_v7 = vmul.f32 %v1174_v5, %v1164_v6  ;;  %v1165_v8 = vld [vmem:[#allocation2 + $0x10] sm:$0xf]  ;;  %v1197_v10 = vld [vmem:[#allocation2 + $0x8] sm:$0xf]  ;;  %v1239_v5 = vpop.permute.xlu1 %1238 }
 0x5dd   : > { %v1180_v9 = vmul.f32 %v1173_v55, %v1165_v8  ;;  %v1198_v12 = vld [vmem:[#allocation2 + $0x10] sm:$0xf]  ;;  %v1203_v13 = vrot.slane %v1197_v10, 4  ;;  %v1218_v16 = vld [vmem:[#allocation2 + $0x8] sm:$0xf] }
 0x5de   : > { %1186 = vrot.lane.b32.xlu1 %v1179_v7, %s1745_s8  ;;  %v1204_v18 = vrot.slane %v1198_v12, 4  ;;  %v1287_v15 = vld [vmem:[#allocation2 + $0x10] sm:$0xf]  ;;  %v1286_v19 = vld [vmem:[#allocation2 + $0x8] sm:$0xf]  ;;  %v1233_v26 = vmul.f32 %v1228_v24, %v1218_v16 }
 0x5df   : > { %1188 = vrot.lane.b32.xlu0 %v1180_v9, %s1745_s8  ;;  %v1219_v20 = vld [vmem:[#allocation2 + $0x10] sm:$0xf]  ;;  %1289 = vst [vmem:[#allocation3 + $0x28] sm:$0xf] %v1287_v15  ;;  %1288 = vst [vmem:[#allocation3 + $0x20] sm:$0xf] %v1286_v19 }
 0x5e0   : > { %v1252_v21 = vld [vmem:[#allocation2 + $0x10] sm:$0xf]  ;;  %v1234_v29 = vmul.f32 %v1227_v57, %v1219_v20  ;;  %v1251_v17 = vld [vmem:[#allocation2 + $0x8] sm:$0xf] }
 0x5e1   : > { %v1327_v27 = vld [vmem:[#allocation2 + $0x10] sm:$0xf]  ;;  %v1267_v30 = vmul.f32 %v2141_v50, %v1252_v21  ;;  %v1326_v14 = vld [vmem:[#allocation2 + $0x8] sm:$0xf]  ;;  %v1266_v43 = vmul.f32 %v1261_v37, %v1251_v17  ;;  %v1301_v50 = vsel %vm588_vm10, %v1298_v11, %v2147_v59  ;;  %v1275_v59 = vpop.permute.xlu0 %1274 }
 0x5e2   : > { %1207 = vrot.lane.b32.xlu1 %v1203_v13, %s1747_s14  ;;  %v1342_v31 = vmul.f32 %v1337_v28, %v1327_v27  ;;  %v1360_v35 = vld [vmem:[#allocation2 + $0x10] sm:$0xf]  ;;  %v1341_v44 = vmul.f32 %v1334_v25, %v1326_v14  ;;  %v1290_v47 = vld [vmem:[#allocation2 + $0x8] sm:$0xf] }
 0x5e3   : > { %1209 = vrot.lane.b32.xlu0 %v1204_v18, %s1747_s14  ;;  %v1273_v34 = vrot.slane %v1267_v30, 4  ;;  %v1366_v41 = vrot.slane %v1360_v35, 4  ;;  %v1381_v48 = vld [vmem:[#allocation2 + $0x10] sm:$0xf]  ;;  %v1272_v51 = vrot.slane %v1266_v43, 4  ;;  %v1305_v52 = vmul.f32 %v1298_v11, %v1290_v47 }
 0x5e4   : > { %v1396_v53 = vmul.f32 %v1391_v49, %v1381_v48  ;;  %v1380_v55 = vld [vmem:[#allocation2 + $0x8] sm:$0xf]  ;;  %v1291_v58 = vld [vmem:[#allocation2 + $0x10] sm:$0xf] }
 0x5e5   : > { %v1311_v39 = vrot.slane %v1305_v52, 4  ;;  %v1395_v56 = vmul.f32 %v1388_v38, %v1380_v55  ;;  %v1359_v57 = vld [vmem:[#allocation2 + $0x8] sm:$0xf]  ;;  %v1306_v61 = vmul.f32 %v1301_v50, %v1291_v58  ;;  %v1319_v2 = vpop.permute.xlu0 %1318 }
 0x5e6   : > { %1240 = vrot.lane.b32.xlu1 %v1233_v26, %s1744_s30  ;;  %v1365_v60 = vrot.slane %v1359_v57, 4 }
 0x5e7   : > { %1242 = vrot.lane.b32.xlu0 %v1234_v29, %s1744_s30  ;;  %v1312_v62 = vrot.slane %v1306_v61, 4 }
 0x5e9   : > { %v1352_v4 = vpop.permute.xlu0 %1351 }
 0x5ea   : > { %1349 = vrot.lane.b32.xlu1 %v1342_v31, %s1743_s25 }
 0x5eb   : > { %1278 = vrot.lane.b32.xlu0 %v1273_v34, %s1748_s18 }
 0x5ed   : > { %v1373_v6 = vpop.permute.xlu0 %1372 }
 0x5ee   : > { %1370 = vrot.lane.b32.xlu1 %v1366_v41, %s1749_s27 }
 0x5ef   : > { %1347 = vrot.lane.b32.xlu0 %v1341_v44, %s1743_s25 }
 0x5f2   : > { %1276 = vrot.lane.b32.xlu1 %v1272_v51, %s1748_s18 }
 0x5f3   : > { %1403 = vrot.lane.b32.xlu0 %v1396_v53, %s1742_s20 }
 0x5f6   : > { %1314 = vrot.lane.b32.xlu1 %v1311_v39, %s1746_s9 }
 0x5f7   : > { %1401 = vrot.lane.b32.xlu0 %v1395_v56, %s1742_s20 }
 0x5fa   : > { %1368 = vrot.lane.b32.xlu1 %v1365_v60, %s1749_s27 }
 0x5fe   : > { %1316 = vrot.lane.b32.xlu1 %v1312_v62, %s1746_s9 }
 0x602   : > { %1405 = vrot.lane.b32.xlu1 %v1397_v0, %s1742_s20 }
 0x650   : > { %v1187_v7 = vpop.permute.xlu1 %1186 }
 0x651   : > { %v1190_v8 = vsel %vm499_vm12, %v1185_v3, %v1187_v7  ;;  %v1189_v9 = vpop.permute.xlu0 %1188  ;;  %v1432_v3 = vld [vmem:[#allocation3 + $0x90] sm:$0x1] }
 0x652   : > { %1194 = vst [vmem:[#allocation3] sm:$0xf] %v1190_v8  ;;  %v1191_v10 = vsel %vm499_vm12, %v1187_v7, %v1189_v9 }
 0x653   : > { %1195 = vst [vmem:[#allocation3 + $0x8] sm:$0xf] %v1191_v10 }
 0x654   : > { %v1208_v11 = vpop.permute.xlu1 %1207 }
 0x655   : > { %v1211_v12 = vsel %vm518_vm13, %v1206_v1, %v1208_v11  ;;  %v1210_v13 = vpop.permute.xlu0 %1209 }
 0x656   : > { %1215 = vst [vmem:[#allocation3] sm:$0xf0] %v1211_v12  ;;  %v1212_v16 = vsel %vm518_vm13, %v1208_v11, %v1210_v13 }
 0x657   : > { %1216 = vst [vmem:[#allocation3 + $0x8] sm:$0xf0] %v1212_v16 }
 0x658   : > { %v1241_v18 = vpop.permute.xlu1 %1240 }
 0x659   : > { %v1244_v15 = vsel %vm553_vm11, %v1239_v5, %v1241_v18  ;;  %v1243_v19 = vpop.permute.xlu0 %1242 }
 0x65a   : > { %1248 = vst [vmem:[#allocation3 + $0x10] sm:$0xf] %v1244_v15  ;;  %v1245_v20 = vsel %vm553_vm11, %v1241_v18, %v1243_v19 }
 0x65b   : > { %1249 = vst [vmem:[#allocation3 + $0x18] sm:$0xf] %v1245_v20 }
 0x65c   : > { %v1350_v21 = vpop.permute.xlu1 %1349 }
 0x65d   : > { %v1354_v24 = vsel %vm536_vm8, %v1350_v21, %v1352_v4  ;;  %v1279_v25 = vpop.permute.xlu0 %1278  ;;  %v1414_v40 = vld [vmem:[#allocation3] sm:$0xff]  ;;  %v1679_v4 = vpack.c.bf16 %v1432_v3, %v2133_v42 }
 0x65e   : > { %1358 = vst [vmem:[#allocation3 + $0x38] sm:$0xf] %v1354_v24  ;;  %v1415_v43 = vld [vmem:[#allocation3 + $0x8] sm:$0xff] }
 0x660   : > { %v1371_v26 = vpop.permute.xlu1 %1370 }
 0x661   : > { %v1375_v27 = vsel %vm677_vm14, %v1371_v26, %v1373_v6  ;;  %v1348_v28 = vpop.permute.xlu0 %1347 }
 0x662   : > { %1379 = vst [vmem:[#allocation3 + $0x38] sm:$0xf0] %v1375_v27  ;;  %v1353_v29 = vsel %vm536_vm8, %v1348_v28, %v1350_v21 }
 0x663   : > { %1357 = vst [vmem:[#allocation3 + $0x30] sm:$0xf] %v1353_v29 }
 0x664   : > { %v1277_v30 = vpop.permute.xlu1 %1276 }
 0x665   : > { %v1280_v31 = vsel %vm588_vm10, %v1275_v59, %v1277_v30  ;;  %v1281_v34 = vsel %vm588_vm10, %v1277_v30, %v1279_v25  ;;  %v1404_v35 = vpop.permute.xlu0 %1403  ;;  %v1433_v59 = vld [vmem:[#allocation3 + $0x98] sm:$0x1] }
 0x666   : > { %1284 = vst [vmem:[#allocation3 + $0x10] sm:$0xf0] %v1280_v31  ;;  %1285 = vst [vmem:[#allocation3 + $0x18] sm:$0xf0] %v1281_v34 }
 0x668   : > { %v1315_v17 = vpop.permute.xlu1 %1314 }
 0x669   : > { %v1402_v14 = vpop.permute.xlu0 %1401  ;;  %v1421_v50 = vld [vmem:[#allocation3 + $0x38] sm:$0xff] }
 0x66a   : > { %v1407_v37 = vsel %vm482_vm7, %v1402_v14, %v1404_v35 }
 0x66b   : > { %1411 = vst [vmem:[#allocation3 + $0x40] sm:$0xf] %v1407_v37 }
 0x66c   : > { %v1369_v38 = vpop.permute.xlu1 %1368 }
 0x66d   : > { %v1374_v41 = vsel %vm677_vm14, %v1369_v38, %v1371_v26  ;;  %v1417_v44 = vld [vmem:[#allocation3 + $0x18] sm:$0xff]  ;;  %v1416_v47 = vld [vmem:[#allocation3 + $0x10] sm:$0xff] }
 0x66e   : > { %1378 = vst [vmem:[#allocation3 + $0x30] sm:$0xf0] %v1374_v41  ;;  %v1660_v48 = vpack.c.bf16 %v1417_v44, %v1415_v43  ;;  %v1662_v49 = vpack.c.bf16 %v1416_v47, %v1414_v40 }
 0x670   : > { %v1317_v51 = vpop.permute.xlu1 %1316  ;;  %1661 = vmatprep.subr.bf16.mxu1 %v1660_v48 }
 0x671   : > { %v1320_v52 = vsel %vm571_vm9, %v1315_v17, %v1317_v51  ;;  %v1321_v53 = vsel %vm571_vm9, %v1317_v51, %v1319_v2  ;;  %1663 = vmatpush1.bf16.msra.mxu1 %v1662_v49  ;;  %v1676_v2 = vpack.c.bf16 %v1433_v59, %v2123_v36  ;;  %v1730_v36 = vld [vmem:[%s1784_s17] sm:$0xff] }
 0x672   : > { %1324 = vst [vmem:[#allocation3 + $0x20] sm:$0xf0] %v1320_v52  ;;  %1325 = vst [vmem:[#allocation3 + $0x28] sm:$0xf0] %v1321_v53  ;;  %v1422_v62 = vld [vmem:[#allocation3 + $0x40] sm:$0xff]  ;;  %v171_v5 = vmul.f32 0.25, %v1730_v36 }
 0x673   : > { %v1670_v1 = vpack.c.bf16 %v2105_v22, %v1422_v62  ;;  %v1413_v22 = vld [vmem:[%s2248_s2 + $0xc] sm:$0xf] }
 0x674   : > { %v1406_v55 = vpop.permute.xlu1 %1405  ;;  %v174_v6 = vsel %vm173_vm2, %v171_v5, -inf  ;;  %v217_v7 = vsel %vm216_vm3, %v171_v5, -inf }
 0x675   : > { %v1408_v39 = vsel %vm482_vm7, %v1404_v35, %v1406_v55  ;;  %v1420_v58 = vld [vmem:[#allocation3 + $0x30] sm:$0xff]  ;;  %v175_v8 = vrot.slane %v174_v6, 4  ;;  %v218_v10 = vrot.slane %v217_v7, 4 }
 0x676   : > { %1412 = vst [vmem:[#allocation3 + $0x48] sm:$0xf] %v1408_v39 }
 0x677   : > { %v176_v12 = vmax.f32 %v174_v6, %v175_v8  ;;  %v219_v16 = vmax.f32 %v217_v7, %v218_v10 }
 0x679   : > { %v1419_v56 = vld [vmem:[#allocation3 + $0x28] sm:$0xff]  ;;  %v1418_v57 = vld [vmem:[#allocation3 + $0x20] sm:$0xff]  ;;  %v177_v15 = vrot.slane %v176_v12, 2  ;;  %v220_v20 = vrot.slane %v219_v16, 2 }
 0x67a   : > { %v1664_v60 = vpack.c.bf16 %v1421_v50, %v1419_v56  ;;  %v1666_v61 = vpack.c.bf16 %v1420_v58, %v1418_v57 }
 0x67b   : > { %v178_v21 = vmax.f32 %v176_v12, %v177_v15  ;;  %v221_v27 = vmax.f32 %v219_v16, %v220_v20 }
 0x67c   : > { %1665 = vmatprep.subr.bf16.mxu1 %v1664_v60 }
 0x67d   : > { %1667 = vmatpush1.bf16.msra.mxu1 %v1666_v61  ;;  %v1423_v63 = vld [vmem:[#allocation3 + $0x48] sm:$0xff]  ;;  %v179_v25 = vrot.slane %v178_v21, 1  ;;  %v222_v31 = vrot.slane %v221_v27, 1 }
 0x67e   : > { %v1668_v0 = vpack.c.bf16 %v2108_v23, %v1423_v63  ;;  %v1729_v23 = vld [vmem:[%s1784_s17 + $0x8] sm:$0xff]  ;;  %s1602_s17 = sshll.u32 %s2253_s13, 1 }
 0x67f   : > { %v180_v29 = vmax.f32 %v178_v21, %v179_v25  ;;  %v223_v14 = vmax.f32 %v221_v27, %v222_v31  ;;  %s168_s14 = scalar_lea.vmem %s2249_s3, %s1602_s17 }
 0x680   : > { %1669 = vmatprep.subr.bf16.mxu1 %v1668_v0 }
 0x681   : > { %1671 = vmatpush1.bf16.msra.mxu1 %v1670_v1  ;;  %v188_v35 = vsub.f32 %v171_v5, %v180_v29  ;;  %v2217_v41 = vsub.f32 %v171_v5, %v223_v14 }
 0x682   : > { %1673 = vmatprep.subr.bf16.mxu1 %v2117_v32  ;;  %v172_v32 = vmul.f32 0.25, %v1729_v23 }
 0x683   : > { %v190_v38 = vmul.f32 1.442695, %v188_v35  ;;  %v233_v44 = vmul.f32 1.442695, %v2217_v41 }
 0x684   : > { %v224_v42 = vsel %vm216_vm3, %v172_v32, -inf }
 0x685   : > { %1675 = vmatpush1.bf16.msra.mxu1 %v2119_v33  ;;  %v181_v33 = vsel %vm173_vm2, %v172_v32, -inf  ;;  %v225_v9 = vrot.slane %v224_v42, 4  ;;  %1709 = vpow2.f32 %v190_v38 }
 0x686   : > { %1678 = vmatprep.subr.msk.bf16.mxu1 %vm1977_vm0, %v1676_v2  ;;  %v182_v54 = vrot.slane %v181_v33, 4 }
 0x687   : > { %v226_v13 = vmax.f32 %v224_v42, %v225_v9 }
 0x688   : > { %v183_v11 = vmax.f32 %v181_v33, %v182_v54 }
 0x689   : > { %1681 = vmatpush1.bf16.msk.msra.mxu1 %vm1977_vm0, %v1679_v4  ;;  %v227_v19 = vrot.slane %v226_v13, 2 }
 0x68a   : > { %v184_v18 = vrot.slane %v183_v11, 2 }
 0x68b   : > { %v228_v28 = vmax.f32 %v226_v13, %v227_v19 }
 0x68c   : > { %1612 = vmatmul.mubr.msk.f32.vlgmr.msra.gmra.mrb[2].mxu1 %vm738_vm1, %v1413_v22  ;;  %v185_v24 = vmax.f32 %v183_v11, %v184_v18 }
 0x68d   : > { %v229_v34 = vrot.slane %v228_v28, 1 }
 0x68e   : > { %v186_v26 = vrot.slane %v185_v24, 1 }
 0x68f   : > { %v230_v37 = vmax.f32 %v228_v28, %v229_v34  ;;  %v1710_v48 = vpop.eup %1709 }
 0x690   : > { %v187_v30 = vmax.f32 %v185_v24, %v186_v26  ;;  %v194_v51 = vsel %vm173_vm2, %v1710_v48, 0.0 }
 0x691   : > { %v2219_v43 = vsub.f32 %v172_v32, %v230_v37  ;;  %v195_v53 = vrot.slane %v194_v51, 4 }
 0x692   : > { %v2214_v17 = vsub.f32 %v172_v32, %v187_v30 }
 0x693   : > { %v235_v47 = vmul.f32 1.442695, %v2219_v43  ;;  %v196_v57 = vadd.f32 %v195_v53, %v194_v51 }
 0x694   : > { %v192_v40 = vmul.f32 1.442695, %v2214_v17 }
 0x695   : > { %v197_v62 = vrot.slane %v196_v57, 2 }
 0x696   : > { %1711 = vpow2.f32 %v192_v40 }
 0x697   : > { %1713 = vpow2.f32 %v233_v44  ;;  %v198_v2 = vadd.f32 %v197_v62, %v196_v57 }
 0x698   : > { %1715 = vpow2.f32 %v235_v47 }
 0x699   : > { %v199_v23 = vrot.slane %v198_v2, 1 }
 0x69b   : > { %v200_v33 = vadd.f32 %v199_v23, %v198_v2 }
 0x69d   : > { %1717 = vlog2.f32 %v200_v33 }
 0x6a0   : > { %v1712_v49 = vpop.eup %1711 }
 0x6a1   : > { %v1714_v52 = vpop.eup %1713  ;;  %v201_v55 = vsel %vm173_vm2, %v1712_v49, 0.0 }
 0x6a2   : > { %v1716_v39 = vpop.eup %1715  ;;  %v202_v50 = vrot.slane %v201_v55, 4  ;;  %v239_v56 = vrot.slane %v1714_v52, 4 }
 0x6a3   : > { %v240_v58 = vrot.slane %v1716_v39, 4 }
 0x6a4   : > { %v203_v60 = vadd.f32 %v202_v50, %v201_v55  ;;  %v243_v61 = vsel %vm173_vm2, %v239_v56, 0.0 }
 0x6a5   : > { %v244_v63 = vrot.slane %v243_v61, 4  ;;  %v250_v0 = vsel %vm173_vm2, %v240_v58, 0.0 }
 0x6a6   : > { %v204_v1 = vrot.slane %v203_v60, 2  ;;  %v251_v59 = vrot.slane %v250_v0, 4 }
 0x6a7   : > { %v245_v3 = vadd.f32 %v244_v63, %v243_v61  ;;  %v1718_v11 = vpop.eup %1717 }
 0x6a8   : > { %v205_v4 = vadd.f32 %v204_v1, %v203_v60  ;;  %v252_v22 = vadd.f32 %v251_v59, %v250_v0  ;;  %v209_v13 = vmul.f32 0.6931472, %v1718_v11 }
 0x6a9   : > { %v246_v32 = vrot.slane %v245_v3, 2 }
 0x6aa   : > { %v206_v36 = vrot.slane %v205_v4, 1  ;;  %v253_v5 = vrot.slane %v252_v22, 2  ;;  %v212_v18 = vsub.f32 %v188_v35, %v209_v13 }
 0x6ab   : > { %v247_v6 = vadd.f32 %v246_v32, %v245_v3 }
 0x6ac   : > { %v207_v42 = vadd.f32 %v206_v36, %v205_v4  ;;  %v254_v7 = vadd.f32 %v253_v5, %v252_v22  ;;  %v214_v21 = vadd.f32 1e-07, %v212_v18 }
 0x6ad   : > { %v248_v54 = vrot.slane %v247_v6, 1 }
 0x6ae   : > { %1719 = vlog2.f32 %v207_v42  ;;  %v255_v8 = vrot.slane %v254_v7, 1  ;;  %v269_v28 = vrot.slane %v214_v21, 4 }
 0x6af   : > { %v249_v9 = vadd.f32 %v248_v54, %v247_v6 }
 0x6b0   : > { %v256_v10 = vadd.f32 %v255_v8, %v254_v7 }
 0x6b1   : > { %1721 = vlog2.f32 %v249_v9 }
 0x6b2   : > { %1723 = vlog2.f32 %v256_v10 }
 0x6b3   : > { %1725 = vrcp.f32 %v249_v9 }
 0x6b4   : > { %1727 = vrcp.f32 %v256_v10 }
 0x6b8   : > { %v1720_v12 = vpop.eup %1719 }
 0x6b9   : > { %v211_v16 = vmul.f32 0.6931472, %v1720_v12 }
 0x6bb   : > { %v1722_v15 = vpop.eup %1721  ;;  %v213_v19 = vsub.f32 %v2214_v17, %v211_v16 }
 0x6bc   : > { %v1724_v20 = vpop.eup %1723  ;;  %v262_v24 = vmul.f32 0.6931472, %v1722_v15 }
 0x6bd   : > { %v215_v25 = vadd.f32 1e-07, %v213_v19  ;;  %v264_v26 = vmul.f32 0.6931472, %v1724_v20  ;;  %v1726_v29 = vpop.eup %1725 }
 0x6be   : > { %v265_v27 = vsub.f32 %v2217_v41, %v262_v24  ;;  %v1728_v34 = vpop.eup %1727  ;;  %v259_v14 = vmul.f32 %v1726_v29, %v1714_v52  ;;  %v1516_v41 = vrot.slane %v1890_v45, 4 }
 0x6bf   : > { %v266_v30 = vsub.f32 %v2219_v43, %v264_v26  ;;  %v270_v31 = vrot.slane %v215_v25, 4  ;;  %v260_v38 = vmul.f32 %v1728_v34, %v1716_v39  ;;  %v1517_v43 = vrot.slane %v1892_v46, 4 }
 0x6c0   : > { %v273_v37 = vsub.f32 %v265_v27, %v269_v28  ;;  %v1520_v53 = vsub.f32 %v1890_v45, %v1516_v41 }
 0x6c1   : > { %v274_v35 = vsub.f32 %v266_v30, %v270_v31  ;;  %v1521_v55 = vsub.f32 %v1892_v46, %v1517_v43 }
 0x6c2   : > { %v275_v40 = vmul.f32 %v273_v37, %v259_v14 }
 0x6c3   : > { %v276_v44 = vmul.f32 %v274_v35, %v260_v38 }
 0x6c4   : > { %v279_v17 = vrot.slane %v275_v40, 4 }
 0x6c5   : > { %v280_v47 = vrot.slane %v276_v44, 4 }
 0x6c6   : > { %v283_v48 = vsel %vm173_vm2, %v279_v17, 0.0 }
 0x6c7   : > { %v284_v49 = vsel %vm173_vm2, %v280_v47, 0.0 }
 0x6c8   : > { %v285_v51 = vadd.f32 %v284_v49, %v283_v48 }
 0x6ca   : > { %286 = vadd.xlane.f32.xlu1 %v285_v51 }
 0x757   : > { %v287_v63 = vpop.xlane.xlu1 %286 }
 0x758   : > { %v288_v0 = vrot.slane %v287_v63, 4 }
 0x75a   : > { %v289_v1 = vadd.f32 %v288_v0, %v287_v63 }
 0x75c   : > { %v290_v59 = vrot.slane %v289_v1, 2 }
 0x75e   : > { %v291_v45 = vadd.f32 %v290_v59, %v289_v1 }
 0x75f   : > { %v1509_v52 = vpop.f32.mrb[2].mxu1 }
 0x760   : > { %v1522_v39 = vmul.f32 %v1520_v53, %v1509_v52  ;;  %v1511_v50 = vpop.f32.mrb[3].mxu1  ;;  %v292_v2 = vrot.slane %v291_v45, 1 }
 0x761   : > { %v1523_v56 = vmul.f32 %v1521_v55, %v1511_v50 }
 0x762   : > { %v1524_v57 = vmul.f32 %v1522_v39, %v1522_v39  ;;  %v293_v3 = vadd.f32 %v292_v2, %v291_v45 }
 0x763   : > { %v1525_v58 = vmul.f32 %v1523_v56, %v1523_v56 }
 0x764   : > { %v1526_v60 = vsel %vm173_vm2, %v1524_v57, 0.0  ;;  %1682 = vpush %v293_v3 }
 0x765   : > { %v1527_v61 = vsel %vm173_vm2, %v1525_v58, 0.0 }
 0x766   : > { %v1528_v62 = vadd.f32 %v1527_v61, %v1526_v60 }
 0x768   : > { %1529 = vadd.xlane.f32.xlu0 %v1528_v62 }
 0x795   : > { %s1683_s30 = spop %1682 }
 0x796   : > { %v1538_v33 = vstv %s1683_s30 }
 0x7f5   : > { %v1530_v46 = vpop.xlane.xlu0 %1529 }
 0x7f6   : > { %v1531_v4 = vrot.slane %v1530_v46, 4 }
 0x7f8   : > { %v1532_v22 = vadd.f32 %v1531_v4, %v1530_v46 }
 0x7fa   : > { %v1533_v23 = vrot.slane %v1532_v22, 2 }
 0x7fc   : > { %v1534_v32 = vadd.f32 %v1533_v23, %v1532_v22 }
 0x7fe   : > { %v1535_v36 = vrot.slane %v1534_v32, 1 }
 0x800   : > { %v1536_v5 = vadd.f32 %v1535_v36, %v1534_v32 }
 0x802   : > { %1684 = vpush %v1536_v5 }
 0x833   : > { %s1685_s18 = spop %1684 }
 0x834   : > { %v1539_v6 = vstv %s1685_s18 }
 0x835   : > { %v1540_v42 = vsel %vm742_vm15, %v1538_v33, %v1539_v6 }
 0x836   : > { %1541 = vst [vmem:[%s168_s14] sm:$0x3] %v1540_v42 }
 0x837 PF: > { %s13_s12 = sadd.s32 1, %s1737_s12  }
 0x838   : > { %p10_p4 = scmp.ge.s32.totalorder %s13_s12, 4  }
 0x83a   :  { %12 = sbr.rel (!%p10_p4) target bundleno = 1 (0x1), region = 63 }

</bundles_post_ra>
